<compile_context>
chip_gen: v7x
topology: tpu7x:2x2x1
jax: 0.10.0
libtpu: 0.0.40
codegen_flags: <defaults>
</compile_context>

<pallas_src>
import functools

import jax
import jax.numpy as jnp
from jax.experimental import pallas as pl
from jax.experimental.pallas import tpu as pltpu

EPS = 1e-5
VMEM_LIMIT_BYTES = 48 * 1024 * 1024   # explicit scoped-VMEM cap (< 64 MiB physical on v7x)
ROW_TILE_TARGET = 512                 # points per grid step at production sizes


def _mm(a, b):
    """bf16 x bf16 -> f32 matmul: single-pass MXU on v5e/v6e/v7x."""
    return jnp.dot(a.astype(jnp.bfloat16), b.astype(jnp.bfloat16),
                   preferred_element_type=jnp.float32)


def _mm_nt(a, b):
    """(m,k) . (n,k)^T -> (m,n) contraction, no materialized transpose."""
    return jax.lax.dot_general(
        a.astype(jnp.bfloat16), b.astype(jnp.bfloat16),
        dimension_numbers=(((1,), (1,)), ((), ())),
        preferred_element_type=jnp.float32)


# -----------------------------------------------------------------------------
# Kernels
# -----------------------------------------------------------------------------
def prep_kernel(z_ref, c_ref, wz_ref, bz_ref, wg_ref, bg_ref, wbt_ref, bb_ref,
                zproj_ref, gammas_ref, betas_ref):
    """Per-batch tables: fc_z(z) and the six CBN gamma/beta rows (tiny, gridless)."""
    zproj_ref[...] = _mm(z_ref[...], wz_ref[...]) + bz_ref[...]
    for i in range(6):
        gammas_ref[i] = _mm(c_ref[...], wg_ref[i]) + bg_ref[i]
        betas_ref[i] = _mm(c_ref[...], wbt_ref[i]) + bb_ref[i]


def stage_in_kernel(p_ref, zproj_ref, wp_ref, bp_ref, x_ref, sum_ref, sq_ref):
    """x0 = fc_p(p) + fc_z(z); emit per-channel sum / sumsq for bn_0."""
    b = pl.program_id(1)

    @pl.when((pl.program_id(0) == 0) & (b == 0))
    def _():
        sum_ref[...] = jnp.zeros_like(sum_ref)
        sq_ref[...] = jnp.zeros_like(sq_ref)

    x = _mm(p_ref[0], wp_ref[...]) + bp_ref[...]          # (tile_t, H)
    x = x + zproj_ref[pl.ds(b, 1), :]                     # per-batch broadcast (VPU)
    x_ref[0] = x
    sum_ref[...] += jnp.sum(x, axis=0, keepdims=True)     # single-pass stats
    sq_ref[...] += jnp.sum(x * x, axis=0, keepdims=True)


def stage_mid_kernel(x_ref, gamma_ref, beta_ref, sum_in_ref, sq_in_ref,
                     w_ref, bias_ref, y_ref, sum_ref, sq_ref, *, inv_count):
    """y = fc_i(relu(CBN_i(x, c))); emit sum / sumsq of y for CBN_{i+1}."""
    b = pl.program_id(1)

    @pl.when((pl.program_id(0) == 0) & (b == 0))
    def _():
        sum_ref[...] = jnp.zeros_like(sum_ref)
        sq_ref[...] = jnp.zeros_like(sq_ref)

    mean = sum_in_ref[...] * inv_count                    # global (B*T) batch stats
    var = sq_in_ref[...] * inv_count - mean * mean        # biased, E[x^2] - mean^2
    inv = jax.lax.rsqrt(var + EPS)
    g = gamma_ref[pl.ds(b, 1), :]                         # (1, H) for this batch
    bt = beta_ref[pl.ds(b, 1), :]
    h = jnp.maximum(g * ((x_ref[0] - mean) * inv) + bt, 0.0)
    y = _mm(h, w_ref[...]) + bias_ref[...]
    y_ref[0] = y
    sum_ref[...] += jnp.sum(y, axis=0, keepdims=True)
    sq_ref[...] += jnp.sum(y * y, axis=0, keepdims=True)


def stage_out_kernel(x_ref, gamma_ref, beta_ref, sum_in_ref, sq_in_ref,
                     wout_ref, bout_ref, out_ref, *, inv_count):
    """out = fc_out(relu(CBN_5(x, c))) written as lane-dense (1, tile_t) rows."""
    b = pl.program_id(1)
    mean = sum_in_ref[...] * inv_count
    var = sq_in_ref[...] * inv_count - mean * mean
    inv = jax.lax.rsqrt(var + EPS)
    g = gamma_ref[pl.ds(b, 1), :]
    bt = beta_ref[pl.ds(b, 1), :]
    h = jnp.maximum(g * ((x_ref[0] - mean) * inv) + bt, 0.0)   # (tile_t, H)
    row = _mm_nt(wout_ref[...], h) + bout_ref[...]             # (1, tile_t)
    out_ref[0, pl.ds(b, 1), :] = row


# -----------------------------------------------------------------------------
# Wrapper
# -----------------------------------------------------------------------------
def _pick_row_tile(T, target=ROW_TILE_TARGET):
    if T <= target:
        return T
    for cand in range((target // 8) * 8, 0, -8):
        if T % cand == 0:
            return cand
    return T


@jax.jit
def decoder_forward(p, z, c, params):
    B, T, D = p.shape
    H = params["wp"].shape[1]
    tile_t = _pick_row_tile(T)
    num_t = T // tile_t
    grid = (num_t, B)
    inv_count = 1.0 / float(B * T)

    cparams = pltpu.CompilerParams(
        dimension_semantics=("arbitrary", "arbitrary"),
        vmem_limit_bytes=VMEM_LIMIT_BYTES)

    def full(shape):
        # Constant block index -> DMA'd once, resident across the whole grid.
        return pl.BlockSpec(shape, lambda *_: (0,) * len(shape))

    def row_spec(last):
        return pl.BlockSpec((1, tile_t, last), lambda t, b: (b, t, 0))

    stat_shape = jax.ShapeDtypeStruct((1, H), jnp.float32)
    act_shape = jax.ShapeDtypeStruct((B, T, H), jnp.float32)

    # --- per-batch tables (tiny, gridless) -----------------------------------
    vmem = pl.BlockSpec(memory_space=pltpu.MemorySpace.VMEM)
    zproj, gammas, betas = pl.pallas_call(
        prep_kernel,
        out_shape=(jax.ShapeDtypeStruct((B, H), jnp.float32),
                   jax.ShapeDtypeStruct((6, B, H), jnp.float32),
                   jax.ShapeDtypeStruct((6, B, H), jnp.float32)),
        in_specs=[vmem] * 8,
        out_specs=(vmem, vmem, vmem),
        compiler_params=pltpu.CompilerParams(vmem_limit_bytes=VMEM_LIMIT_BYTES),
    )(z, c, params["wz"], params["bz"], params["wg"], params["bg"],
      params["wbt"], params["bb"])

    # --- stage 0: fc_p + fc_z broadcast, stats for bn_0 ----------------------
    x, ssum, ssq = pl.pallas_call(
        stage_in_kernel,
        out_shape=(act_shape, stat_shape, stat_shape),
        grid=grid,
        in_specs=[row_spec(D), full((B, H)), full((D, H)), full((1, H))],
        out_specs=(row_spec(H), full((1, H)), full((1, H))),
        compiler_params=cparams,
    )(p, zproj, params["wp"], params["bp"])

    # --- stages 1..5: CBN_i -> relu -> fc_i, stats for CBN_{i+1} -------------
    for i in range(5):
        x, ssum, ssq = pl.pallas_call(
            functools.partial(stage_mid_kernel, inv_count=inv_count),
            out_shape=(act_shape, stat_shape, stat_shape),
            grid=grid,
            in_specs=[row_spec(H), full((B, H)), full((B, H)),
                      full((1, H)), full((1, H)), full((H, H)), full((1, H))],
            out_specs=(row_spec(H), full((1, H)), full((1, H))),
            compiler_params=cparams,
        )(x, gammas[i], betas[i], ssum, ssq, params["wfc"][i], params["bfc"][i])

    # --- final: CBN_5 -> relu -> fc_out, lane-dense output -------------------
    out3 = pl.pallas_call(
        functools.partial(stage_out_kernel, inv_count=inv_count),
        out_shape=jax.ShapeDtypeStruct((num_t, B, tile_t), jnp.float32),
        grid=grid,
        in_specs=[row_spec(H), full((B, H)), full((B, H)),
                  full((1, H)), full((1, H)), full((1, H)), full((1, 1))],
        out_specs=pl.BlockSpec((1, B, tile_t), lambda t, b: (t, 0, 0)),
        compiler_params=cparams,
    )(x, gammas[5], betas[5], ssum, ssq, params["wout_t"], params["bout"])

    return jnp.transpose(out3, (1, 0, 2)).reshape(B, T)


# -----------------------------------------------------------------------------
# Pure-JAX reference (same bf16-matmul precision policy)
# -----------------------------------------------------------------------------
def reference_forward(p, z, c, params):
    B, T, D = p.shape
    x = p.reshape(B * T, D)
    net = _mm(x, params["wp"]) + params["bp"]
    net_z = _mm(z, params["wz"]) + params["bz"]                 # (B, H)
    net = net + jnp.repeat(net_z, T, axis=0)

    def cbn(xx, i):
        gamma = _mm(c, params["wg"][i]) + params["bg"][i]
        beta = _mm(c, params["wbt"][i]) + params["bb"][i]
        mean = jnp.mean(xx, axis=0, keepdims=True)
        var = jnp.mean((xx - mean) ** 2, axis=0, keepdims=True)
        xn = (xx - mean) / jnp.sqrt(var + EPS)
        return jnp.repeat(gamma, T, axis=0) * xn + jnp.repeat(beta, T, axis=0)

    net = jax.nn.relu(cbn(net, 0))
    for i in range(5):
        net = _mm(net, params["wfc"][i]) + params["bfc"][i]
        net = jax.nn.relu(cbn(net, i + 1))
    out = _mm(net, params["wout_t"].T) + params["bout"]         # (N, 1)
    return out.reshape(B, T)


def make_params(key, dim, z_dim, c_dim, H):
    ks = jax.random.split(key, 12)
    s = 0.1
    return {
        "wp":     s * jax.random.normal(ks[0], (dim, H), jnp.float32),
        "bp":     s * jax.random.normal(ks[1], (1, H), jnp.float32),
        "wz":     s * jax.random.normal(ks[2], (z_dim, H), jnp.float32),
        "bz":     s * jax.random.normal(ks[3], (1, H), jnp.float32),
        "wfc":    s * jax.random.normal(ks[4], (5, H, H), jnp.float32),
        "bfc":    s * jax.random.normal(ks[5], (5, 1, H), jnp.float32),
        "wg":     s * jax.random.normal(ks[6], (6, c_dim, H), jnp.float32),
        "bg":     1.0 + s * jax.random.normal(ks[7], (6, 1, H), jnp.float32),
        "wbt":    s * jax.random.normal(ks[8], (6, c_dim, H), jnp.float32),
        "bb":     s * jax.random.normal(ks[9], (6, 1, H), jnp.float32),
        "wout_t": s * jax.random.normal(ks[10], (1, H), jnp.float32),   # fc_out weight, (1, H)
        "bout":   s * jax.random.normal(ks[11], (1, 1), jnp.float32),
    }


if __name__ == "__main__":
    B, T, dim, z_dim, c_dim, H = 2, 8, 3, 8, 8, 32

    key = jax.random.PRNGKey(0)
    kp, kz, kc, kw = jax.random.split(key, 4)
    p = jax.random.normal(kp, (B, T, dim), jnp.float32)
    z = jax.random.normal(kz, (B, z_dim), jnp.float32)
    c = jax.random.normal(kc, (B, c_dim), jnp.float32)
    params = make_params(kw, dim, z_dim, c_dim, H)

    out = jax.block_until_ready(decoder_forward(p, z, c, params))
    ref = jax.block_until_ready(reference_forward(p, z, c, params))

    assert out.shape == (B, T)
    max_err = float(jnp.max(jnp.abs(out - ref)))
    assert jnp.allclose(out, ref, atol=5e-3, rtol=5e-3), f"mismatch: max abs err {max_err}"

    print("KERNEL_OK")
</pallas_src>

<mosaic_0001>
module attributes {stable_mosaic.version = 11 : i64} {
  func.func @prep_kernel(%arg0: memref<2x8xf32, #tpu.memory_space<vmem>>, %arg1: memref<2x8xf32, #tpu.memory_space<vmem>>, %arg2: memref<8x32xf32, #tpu.memory_space<vmem>>, %arg3: memref<1x32xf32, #tpu.memory_space<vmem>>, %arg4: memref<6x8x32xf32, #tpu.memory_space<vmem>>, %arg5: memref<6x1x32xf32, #tpu.memory_space<vmem>>, %arg6: memref<6x8x32xf32, #tpu.memory_space<vmem>>, %arg7: memref<6x1x32xf32, #tpu.memory_space<vmem>>, %arg8: memref<2x32xf32, #tpu.memory_space<vmem>>, %arg9: memref<6x2x32xf32, #tpu.memory_space<vmem>>, %arg10: memref<6x2x32xf32, #tpu.memory_space<vmem>>) attributes {dimension_semantics = [], scalar_prefetch = 0 : i64, scratch_operands = 0 : i64, tpu.core_type = #tpu.core_type<tc>} {
    %c0 = arith.constant 0 : index
    %c0_0 = arith.constant 0 : index
    %0 = vector.load %arg0[%c0, %c0_0] : memref<2x8xf32, #tpu.memory_space<vmem>>, vector<2x8xf32>
    %c0_1 = arith.constant 0 : index
    %c0_2 = arith.constant 0 : index
    %1 = vector.load %arg2[%c0_1, %c0_2] : memref<8x32xf32, #tpu.memory_space<vmem>>, vector<8x32xf32>
    %2 = arith.truncf %0 : vector<2x8xf32> to vector<2x8xbf16>
    %3 = arith.truncf %1 : vector<8x32xf32> to vector<8x32xbf16>
    %cst = arith.constant dense<0.000000e+00> : vector<2x32xf32>
    %4 = tpu.matmul %2, %3, %cst {dimension_numbers = #tpu.dot_dimension_numbers<[1], [0], [0], [1], [0, 0, 1, 1], [], []>} : vector<2x8xbf16>, vector<8x32xbf16>, vector<2x32xf32> -> vector<2x32xf32>
    %c0_3 = arith.constant 0 : index
    %c0_4 = arith.constant 0 : index
    %5 = vector.load %arg3[%c0_3, %c0_4] : memref<1x32xf32, #tpu.memory_space<vmem>>, vector<1x32xf32>
    %6 = vector.broadcast %5 : vector<1x32xf32> to vector<2x32xf32>
    %7 = arith.addf %4, %6 : vector<2x32xf32>
    %c0_5 = arith.constant 0 : index
    %c0_6 = arith.constant 0 : index
    %8 = vector.load %arg8[%c0_5, %c0_6] : memref<2x32xf32, #tpu.memory_space<vmem>>, vector<2x32xf32>
    tpu.vector_store %arg8[%c0_5, %c0_6], %7 {strides = array<i32>} : memref<2x32xf32, #tpu.memory_space<vmem>>, vector<2x32xf32>,
    %c0_7 = arith.constant 0 : index
    %c0_8 = arith.constant 0 : index
    %9 = vector.load %arg1[%c0_7, %c0_8] : memref<2x8xf32, #tpu.memory_space<vmem>>, vector<2x8xf32>
    %c0_9 = arith.constant 0 : index
    %c0_10 = arith.constant 0 : index
    %c0_11 = arith.constant 0 : index
    %10 = vector.load %arg4[%c0_9, %c0_10, %c0_11] : memref<6x8x32xf32, #tpu.memory_space<vmem>>, vector<1x8x32xf32>
    %11 = vector.shape_cast %10 : vector<1x8x32xf32> to vector<8x32xf32>
    %12 = arith.truncf %9 : vector<2x8xf32> to vector<2x8xbf16>
    %13 = arith.truncf %11 : vector<8x32xf32> to vector<8x32xbf16>
    %cst_12 = arith.constant dense<0.000000e+00> : vector<2x32xf32>
    %14 = tpu.matmul %12, %13, %cst_12 {dimension_numbers = #tpu.dot_dimension_numbers<[1], [0], [0], [1], [0, 0, 1, 1], [], []>} : vector<2x8xbf16>, vector<8x32xbf16>, vector<2x32xf32> -> vector<2x32xf32>
    %c0_13 = arith.constant 0 : index
    %c0_14 = arith.constant 0 : index
    %c0_15 = arith.constant 0 : index
    %15 = vector.load %arg5[%c0_13, %c0_14, %c0_15] : memref<6x1x32xf32, #tpu.memory_space<vmem>>, vector<1x1x32xf32>
    %16 = vector.shape_cast %15 : vector<1x1x32xf32> to vector<1x32xf32>
    %17 = vector.broadcast %16 : vector<1x32xf32> to vector<2x32xf32>
    %18 = arith.addf %14, %17 : vector<2x32xf32>
    %c0_16 = arith.constant 0 : index
    %c0_17 = arith.constant 0 : index
    %c0_18 = arith.constant 0 : index
    %19 = vector.load %arg9[%c0_16, %c0_17, %c0_18] : memref<6x2x32xf32, #tpu.memory_space<vmem>>, vector<1x2x32xf32>
    %20 = vector.shape_cast %19 : vector<1x2x32xf32> to vector<2x32xf32>
    %21 = vector.shape_cast %18 : vector<2x32xf32> to vector<1x2x32xf32>
    tpu.vector_store %arg9[%c0_16, %c0_17, %c0_18], %21 {strides = array<i32>} : memref<6x2x32xf32, #tpu.memory_space<vmem>>, vector<1x2x32xf32>,
    %c0_19 = arith.constant 0 : index
    %c0_20 = arith.constant 0 : index
    %22 = vector.load %arg1[%c0_19, %c0_20] : memref<2x8xf32, #tpu.memory_space<vmem>>, vector<2x8xf32>
    %c0_21 = arith.constant 0 : index
    %c0_22 = arith.constant 0 : index
    %c0_23 = arith.constant 0 : index
    %23 = vector.load %arg6[%c0_21, %c0_22, %c0_23] : memref<6x8x32xf32, #tpu.memory_space<vmem>>, vector<1x8x32xf32>
    %24 = vector.shape_cast %23 : vector<1x8x32xf32> to vector<8x32xf32>
    %25 = arith.truncf %22 : vector<2x8xf32> to vector<2x8xbf16>
    %26 = arith.truncf %24 : vector<8x32xf32> to vector<8x32xbf16>
    %cst_24 = arith.constant dense<0.000000e+00> : vector<2x32xf32>
    %27 = tpu.matmul %25, %26, %cst_24 {dimension_numbers = #tpu.dot_dimension_numbers<[1], [0], [0], [1], [0, 0, 1, 1], [], []>} : vector<2x8xbf16>, vector<8x32xbf16>, vector<2x32xf32> -> vector<2x32xf32>
    %c0_25 = arith.constant 0 : index
    %c0_26 = arith.constant 0 : index
    %c0_27 = arith.constant 0 : index
    %28 = vector.load %arg7[%c0_25, %c0_26, %c0_27] : memref<6x1x32xf32, #tpu.memory_space<vmem>>, vector<1x1x32xf32>
    %29 = vector.shape_cast %28 : vector<1x1x32xf32> to vector<1x32xf32>
    %30 = vector.broadcast %29 : vector<1x32xf32> to vector<2x32xf32>
    %31 = arith.addf %27, %30 : vector<2x32xf32>
    %c0_28 = arith.constant 0 : index
    %c0_29 = arith.constant 0 : index
    %c0_30 = arith.constant 0 : index
    %32 = vector.load %arg10[%c0_28, %c0_29, %c0_30] : memref<6x2x32xf32, #tpu.memory_space<vmem>>, vector<1x2x32xf32>
    %33 = vector.shape_cast %32 : vector<1x2x32xf32> to vector<2x32xf32>
    %34 = vector.shape_cast %31 : vector<2x32xf32> to vector<1x2x32xf32>
    tpu.vector_store %arg10[%c0_28, %c0_29, %c0_30], %34 {strides = array<i32>} : memref<6x2x32xf32, #tpu.memory_space<vmem>>, vector<1x2x32xf32>,
    %c0_31 = arith.constant 0 : index
    %c0_32 = arith.constant 0 : index
    %35 = vector.load %arg1[%c0_31, %c0_32] : memref<2x8xf32, #tpu.memory_space<vmem>>, vector<2x8xf32>
    %c1 = arith.constant 1 : index
    %c0_33 = arith.constant 0 : index
    %c0_34 = arith.constant 0 : index
    %36 = vector.load %arg4[%c1, %c0_33, %c0_34] : memref<6x8x32xf32, #tpu.memory_space<vmem>>, vector<1x8x32xf32>
    %37 = vector.shape_cast %36 : vector<1x8x32xf32> to vector<8x32xf32>
    %38 = arith.truncf %35 : vector<2x8xf32> to vector<2x8xbf16>
    %39 = arith.truncf %37 : vector<8x32xf32> to vector<8x32xbf16>
    %cst_35 = arith.constant dense<0.000000e+00> : vector<2x32xf32>
    %40 = tpu.matmul %38, %39, %cst_35 {dimension_numbers = #tpu.dot_dimension_numbers<[1], [0], [0], [1], [0, 0, 1, 1], [], []>} : vector<2x8xbf16>, vector<8x32xbf16>, vector<2x32xf32> -> vector<2x32xf32>
    %c1_36 = arith.constant 1 : index
    %c0_37 = arith.constant 0 : index
    %c0_38 = arith.constant 0 : index
    %41 = vector.load %arg5[%c1_36, %c0_37, %c0_38] : memref<6x1x32xf32, #tpu.memory_space<vmem>>, vector<1x1x32xf32>
    %42 = vector.shape_cast %41 : vector<1x1x32xf32> to vector<1x32xf32>
    %43 = vector.broadcast %42 : vector<1x32xf32> to vector<2x32xf32>
    %44 = arith.addf %40, %43 : vector<2x32xf32>
    %c1_39 = arith.constant 1 : index
    %c0_40 = arith.constant 0 : index
    %c0_41 = arith.constant 0 : index
    %45 = vector.load %arg9[%c1_39, %c0_40, %c0_41] : memref<6x2x32xf32, #tpu.memory_space<vmem>>, vector<1x2x32xf32>
    %46 = vector.shape_cast %45 : vector<1x2x32xf32> to vector<2x32xf32>
    %47 = vector.shape_cast %44 : vector<2x32xf32> to vector<1x2x32xf32>
    tpu.vector_store %arg9[%c1_39, %c0_40, %c0_41], %47 {strides = array<i32>} : memref<6x2x32xf32, #tpu.memory_space<vmem>>, vector<1x2x32xf32>,
    %c0_42 = arith.constant 0 : index
    %c0_43 = arith.constant 0 : index
    %48 = vector.load %arg1[%c0_42, %c0_43] : memref<2x8xf32, #tpu.memory_space<vmem>>, vector<2x8xf32>
    %c1_44 = arith.constant 1 : index
    %c0_45 = arith.constant 0 : index
    %c0_46 = arith.constant 0 : index
    %49 = vector.load %arg6[%c1_44, %c0_45, %c0_46] : memref<6x8x32xf32, #tpu.memory_space<vmem>>, vector<1x8x32xf32>
    %50 = vector.shape_cast %49 : vector<1x8x32xf32> to vector<8x32xf32>
    %51 = arith.truncf %48 : vector<2x8xf32> to vector<2x8xbf16>
    %52 = arith.truncf %50 : vector<8x32xf32> to vector<8x32xbf16>
    %cst_47 = arith.constant dense<0.000000e+00> : vector<2x32xf32>
    %53 = tpu.matmul %51, %52, %cst_47 {dimension_numbers = #tpu.dot_dimension_numbers<[1], [0], [0], [1], [0, 0, 1, 1], [], []>} : vector<2x8xbf16>, vector<8x32xbf16>, vector<2x32xf32> -> vector<2x32xf32>
    %c1_48 = arith.constant 1 : index
    %c0_49 = arith.constant 0 : index
    %c0_50 = arith.constant 0 : index
    %54 = vector.load %arg7[%c1_48, %c0_49, %c0_50] : memref<6x1x32xf32, #tpu.memory_space<vmem>>, vector<1x1x32xf32>
    %55 = vector.shape_cast %54 : vector<1x1x32xf32> to vector<1x32xf32>
    %56 = vector.broadcast %55 : vector<1x32xf32> to vector<2x32xf32>
    %57 = arith.addf %53, %56 : vector<2x32xf32>
    %c1_51 = arith.constant 1 : index
    %c0_52 = arith.constant 0 : index
    %c0_53 = arith.constant 0 : index
    %58 = vector.load %arg10[%c1_51, %c0_52, %c0_53] : memref<6x2x32xf32, #tpu.memory_space<vmem>>, vector<1x2x32xf32>
    %59 = vector.shape_cast %58 : vector<1x2x32xf32> to vector<2x32xf32>
    %60 = vector.shape_cast %57 : vector<2x32xf32> to vector<1x2x32xf32>
    tpu.vector_store %arg10[%c1_51, %c0_52, %c0_53], %60 {strides = array<i32>} : memref<6x2x32xf32, #tpu.memory_space<vmem>>, vector<1x2x32xf32>,
    %c0_54 = arith.constant 0 : index
    %c0_55 = arith.constant 0 : index
    %61 = vector.load %arg1[%c0_54, %c0_55] : memref<2x8xf32, #tpu.memory_space<vmem>>, vector<2x8xf32>
    %c2 = arith.constant 2 : index
    %c0_56 = arith.constant 0 : index
    %c0_57 = arith.constant 0 : index
    %62 = vector.load %arg4[%c2, %c0_56, %c0_57] : memref<6x8x32xf32, #tpu.memory_space<vmem>>, vector<1x8x32xf32>
    %63 = vector.shape_cast %62 : vector<1x8x32xf32> to vector<8x32xf32>
    %64 = arith.truncf %61 : vector<2x8xf32> to vector<2x8xbf16>
    %65 = arith.truncf %63 : vector<8x32xf32> to vector<8x32xbf16>
    %cst_58 = arith.constant dense<0.000000e+00> : vector<2x32xf32>
    %66 = tpu.matmul %64, %65, %cst_58 {dimension_numbers = #tpu.dot_dimension_numbers<[1], [0], [0], [1], [0, 0, 1, 1], [], []>} : vector<2x8xbf16>, vector<8x32xbf16>, vector<2x32xf32> -> vector<2x32xf32>
    %c2_59 = arith.constant 2 : index
    %c0_60 = arith.constant 0 : index
    %c0_61 = arith.constant 0 : index
    %67 = vector.load %arg5[%c2_59, %c0_60, %c0_61] : memref<6x1x32xf32, #tpu.memory_space<vmem>>, vector<1x1x32xf32>
    %68 = vector.shape_cast %67 : vector<1x1x32xf32> to vector<1x32xf32>
    %69 = vector.broadcast %68 : vector<1x32xf32> to vector<2x32xf32>
    %70 = arith.addf %66, %69 : vector<2x32xf32>
    %c2_62 = arith.constant 2 : index
    %c0_63 = arith.constant 0 : index
    %c0_64 = arith.constant 0 : index
    %71 = vector.load %arg9[%c2_62, %c0_63, %c0_64] : memref<6x2x32xf32, #tpu.memory_space<vmem>>, vector<1x2x32xf32>
    %72 = vector.shape_cast %71 : vector<1x2x32xf32> to vector<2x32xf32>
    %73 = vector.shape_cast %70 : vector<2x32xf32> to vector<1x2x32xf32>
    tpu.vector_store %arg9[%c2_62, %c0_63, %c0_64], %73 {strides = array<i32>} : memref<6x2x32xf32, #tpu.memory_space<vmem>>, vector<1x2x32xf32>,
    %c0_65 = arith.constant 0 : index
    %c0_66 = arith.constant 0 : index
    %74 = vector.load %arg1[%c0_65, %c0_66] : memref<2x8xf32, #tpu.memory_space<vmem>>, vector<2x8xf32>
    %c2_67 = arith.constant 2 : index
    %c0_68 = arith.constant 0 : index
    %c0_69 = arith.constant 0 : index
    %75 = vector.load %arg6[%c2_67, %c0_68, %c0_69] : memref<6x8x32xf32, #tpu.memory_space<vmem>>, vector<1x8x32xf32>
    %76 = vector.shape_cast %75 : vector<1x8x32xf32> to vector<8x32xf32>
    %77 = arith.truncf %74 : vector<2x8xf32> to vector<2x8xbf16>
    %78 = arith.truncf %76 : vector<8x32xf32> to vector<8x32xbf16>
    %cst_70 = arith.constant dense<0.000000e+00> : vector<2x32xf32>
    %79 = tpu.matmul %77, %78, %cst_70 {dimension_numbers = #tpu.dot_dimension_numbers<[1], [0], [0], [1], [0, 0, 1, 1], [], []>} : vector<2x8xbf16>, vector<8x32xbf16>, vector<2x32xf32> -> vector<2x32xf32>
    %c2_71 = arith.constant 2 : index
    %c0_72 = arith.constant 0 : index
    %c0_73 = arith.constant 0 : index
    %80 = vector.load %arg7[%c2_71, %c0_72, %c0_73] : memref<6x1x32xf32, #tpu.memory_space<vmem>>, vector<1x1x32xf32>
    %81 = vector.shape_cast %80 : vector<1x1x32xf32> to vector<1x32xf32>
    %82 = vector.broadcast %81 : vector<1x32xf32> to vector<2x32xf32>
    %83 = arith.addf %79, %82 : vector<2x32xf32>
    %c2_74 = arith.constant 2 : index
    %c0_75 = arith.constant 0 : index
    %c0_76 = arith.constant 0 : index
    %84 = vector.load %arg10[%c2_74, %c0_75, %c0_76] : memref<6x2x32xf32, #tpu.memory_space<vmem>>, vector<1x2x32xf32>
    %85 = vector.shape_cast %84 : vector<1x2x32xf32> to vector<2x32xf32>
    %86 = vector.shape_cast %83 : vector<2x32xf32> to vector<1x2x32xf32>
    tpu.vector_store %arg10[%c2_74, %c0_75, %c0_76], %86 {strides = array<i32>} : memref<6x2x32xf32, #tpu.memory_space<vmem>>, vector<1x2x32xf32>,
    %c0_77 = arith.constant 0 : index
    %c0_78 = arith.constant 0 : index
    %87 = vector.load %arg1[%c0_77, %c0_78] : memref<2x8xf32, #tpu.memory_space<vmem>>, vector<2x8xf32>
    %c3 = arith.constant 3 : index
    %c0_79 = arith.constant 0 : index
    %c0_80 = arith.constant 0 : index
    %88 = vector.load %arg4[%c3, %c0_79, %c0_80] : memref<6x8x32xf32, #tpu.memory_space<vmem>>, vector<1x8x32xf32>
    %89 = vector.shape_cast %88 : vector<1x8x32xf32> to vector<8x32xf32>
    %90 = arith.truncf %87 : vector<2x8xf32> to vector<2x8xbf16>
    %91 = arith.truncf %89 : vector<8x32xf32> to vector<8x32xbf16>
    %cst_81 = arith.constant dense<0.000000e+00> : vector<2x32xf32>
    %92 = tpu.matmul %90, %91, %cst_81 {dimension_numbers = #tpu.dot_dimension_numbers<[1], [0], [0], [1], [0, 0, 1, 1], [], []>} : vector<2x8xbf16>, vector<8x32xbf16>, vector<2x32xf32> -> vector<2x32xf32>
    %c3_82 = arith.constant 3 : index
    %c0_83 = arith.constant 0 : index
    %c0_84 = arith.constant 0 : index
    %93 = vector.load %arg5[%c3_82, %c0_83, %c0_84] : memref<6x1x32xf32, #tpu.memory_space<vmem>>, vector<1x1x32xf32>
    %94 = vector.shape_cast %93 : vector<1x1x32xf32> to vector<1x32xf32>
    %95 = vector.broadcast %94 : vector<1x32xf32> to vector<2x32xf32>
    %96 = arith.addf %92, %95 : vector<2x32xf32>
    %c3_85 = arith.constant 3 : index
    %c0_86 = arith.constant 0 : index
    %c0_87 = arith.constant 0 : index
    %97 = vector.load %arg9[%c3_85, %c0_86, %c0_87] : memref<6x2x32xf32, #tpu.memory_space<vmem>>, vector<1x2x32xf32>
    %98 = vector.shape_cast %97 : vector<1x2x32xf32> to vector<2x32xf32>
    %99 = vector.shape_cast %96 : vector<2x32xf32> to vector<1x2x32xf32>
    tpu.vector_store %arg9[%c3_85, %c0_86, %c0_87], %99 {strides = array<i32>} : memref<6x2x32xf32, #tpu.memory_space<vmem>>, vector<1x2x32xf32>,
    %c0_88 = arith.constant 0 : index
    %c0_89 = arith.constant 0 : index
    %100 = vector.load %arg1[%c0_88, %c0_89] : memref<2x8xf32, #tpu.memory_space<vmem>>, vector<2x8xf32>
    %c3_90 = arith.constant 3 : index
    %c0_91 = arith.constant 0 : index
    %c0_92 = arith.constant 0 : index
    %101 = vector.load %arg6[%c3_90, %c0_91, %c0_92] : memref<6x8x32xf32, #tpu.memory_space<vmem>>, vector<1x8x32xf32>
    %102 = vector.shape_cast %101 : vector<1x8x32xf32> to vector<8x32xf32>
    %103 = arith.truncf %100 : vector<2x8xf32> to vector<2x8xbf16>
    %104 = arith.truncf %102 : vector<8x32xf32> to vector<8x32xbf16>
    %cst_93 = arith.constant dense<0.000000e+00> : vector<2x32xf32>
    %105 = tpu.matmul %103, %104, %cst_93 {dimension_numbers = #tpu.dot_dimension_numbers<[1], [0], [0], [1], [0, 0, 1, 1], [], []>} : vector<2x8xbf16>, vector<8x32xbf16>, vector<2x32xf32> -> vector<2x32xf32>
    %c3_94 = arith.constant 3 : index
    %c0_95 = arith.constant 0 : index
    %c0_96 = arith.constant 0 : index
    %106 = vector.load %arg7[%c3_94, %c0_95, %c0_96] : memref<6x1x32xf32, #tpu.memory_space<vmem>>, vector<1x1x32xf32>
    %107 = vector.shape_cast %106 : vector<1x1x32xf32> to vector<1x32xf32>
    %108 = vector.broadcast %107 : vector<1x32xf32> to vector<2x32xf32>
    %109 = arith.addf %105, %108 : vector<2x32xf32>
    %c3_97 = arith.constant 3 : index
    %c0_98 = arith.constant 0 : index
    %c0_99 = arith.constant 0 : index
    %110 = vector.load %arg10[%c3_97, %c0_98, %c0_99] : memref<6x2x32xf32, #tpu.memory_space<vmem>>, vector<1x2x32xf32>
    %111 = vector.shape_cast %110 : vector<1x2x32xf32> to vector<2x32xf32>
    %112 = vector.shape_cast %109 : vector<2x32xf32> to vector<1x2x32xf32>
    tpu.vector_store %arg10[%c3_97, %c0_98, %c0_99], %112 {strides = array<i32>} : memref<6x2x32xf32, #tpu.memory_space<vmem>>, vector<1x2x32xf32>,
    %c0_100 = arith.constant 0 : index
    %c0_101 = arith.constant 0 : index
    %113 = vector.load %arg1[%c0_100, %c0_101] : memref<2x8xf32, #tpu.memory_space<vmem>>, vector<2x8xf32>
    %c4 = arith.constant 4 : index
    %c0_102 = arith.constant 0 : index
    %c0_103 = arith.constant 0 : index
    %114 = vector.load %arg4[%c4, %c0_102, %c0_103] : memref<6x8x32xf32, #tpu.memory_space<vmem>>, vector<1x8x32xf32>
    %115 = vector.shape_cast %114 : vector<1x8x32xf32> to vector<8x32xf32>
    %116 = arith.truncf %113 : vector<2x8xf32> to vector<2x8xbf16>
    %117 = arith.truncf %115 : vector<8x32xf32> to vector<8x32xbf16>
    %cst_104 = arith.constant dense<0.000000e+00> : vector<2x32xf32>
    %118 = tpu.matmul %116, %117, %cst_104 {dimension_numbers = #tpu.dot_dimension_numbers<[1], [0], [0], [1], [0, 0, 1, 1], [], []>} : vector<2x8xbf16>, vector<8x32xbf16>, vector<2x32xf32> -> vector<2x32xf32>
    %c4_105 = arith.constant 4 : index
    %c0_106 = arith.constant 0 : index
    %c0_107 = arith.constant 0 : index
    %119 = vector.load %arg5[%c4_105, %c0_106, %c0_107] : memref<6x1x32xf32, #tpu.memory_space<vmem>>, vector<1x1x32xf32>
    %120 = vector.shape_cast %119 : vector<1x1x32xf32> to vector<1x32xf32>
    %121 = vector.broadcast %120 : vector<1x32xf32> to vector<2x32xf32>
    %122 = arith.addf %118, %121 : vector<2x32xf32>
    %c4_108 = arith.constant 4 : index
    %c0_109 = arith.constant 0 : index
    %c0_110 = arith.constant 0 : index
    %123 = vector.load %arg9[%c4_108, %c0_109, %c0_110] : memref<6x2x32xf32, #tpu.memory_space<vmem>>, vector<1x2x32xf32>
    %124 = vector.shape_cast %123 : vector<1x2x32xf32> to vector<2x32xf32>
    %125 = vector.shape_cast %122 : vector<2x32xf32> to vector<1x2x32xf32>
    tpu.vector_store %arg9[%c4_108, %c0_109, %c0_110], %125 {strides = array<i32>} : memref<6x2x32xf32, #tpu.memory_space<vmem>>, vector<1x2x32xf32>,
    %c0_111 = arith.constant 0 : index
    %c0_112 = arith.constant 0 : index
    %126 = vector.load %arg1[%c0_111, %c0_112] : memref<2x8xf32, #tpu.memory_space<vmem>>, vector<2x8xf32>
    %c4_113 = arith.constant 4 : index
    %c0_114 = arith.constant 0 : index
    %c0_115 = arith.constant 0 : index
    %127 = vector.load %arg6[%c4_113, %c0_114, %c0_115] : memref<6x8x32xf32, #tpu.memory_space<vmem>>, vector<1x8x32xf32>
    %128 = vector.shape_cast %127 : vector<1x8x32xf32> to vector<8x32xf32>
    %129 = arith.truncf %126 : vector<2x8xf32> to vector<2x8xbf16>
    %130 = arith.truncf %128 : vector<8x32xf32> to vector<8x32xbf16>
    %cst_116 = arith.constant dense<0.000000e+00> : vector<2x32xf32>
    %131 = tpu.matmul %129, %130, %cst_116 {dimension_numbers = #tpu.dot_dimension_numbers<[1], [0], [0], [1], [0, 0, 1, 1], [], []>} : vector<2x8xbf16>, vector<8x32xbf16>, vector<2x32xf32> -> vector<2x32xf32>
    %c4_117 = arith.constant 4 : index
    %c0_118 = arith.constant 0 : index
    %c0_119 = arith.constant 0 : index
    %132 = vector.load %arg7[%c4_117, %c0_118, %c0_119] : memref<6x1x32xf32, #tpu.memory_space<vmem>>, vector<1x1x32xf32>
    %133 = vector.shape_cast %132 : vector<1x1x32xf32> to vector<1x32xf32>
    %134 = vector.broadcast %133 : vector<1x32xf32> to vector<2x32xf32>
    %135 = arith.addf %131, %134 : vector<2x32xf32>
    %c4_120 = arith.constant 4 : index
    %c0_121 = arith.constant 0 : index
    %c0_122 = arith.constant 0 : index
    %136 = vector.load %arg10[%c4_120, %c0_121, %c0_122] : memref<6x2x32xf32, #tpu.memory_space<vmem>>, vector<1x2x32xf32>
    %137 = vector.shape_cast %136 : vector<1x2x32xf32> to vector<2x32xf32>
    %138 = vector.shape_cast %135 : vector<2x32xf32> to vector<1x2x32xf32>
    tpu.vector_store %arg10[%c4_120, %c0_121, %c0_122], %138 {strides = array<i32>} : memref<6x2x32xf32, #tpu.memory_space<vmem>>, vector<1x2x32xf32>,
    %c0_123 = arith.constant 0 : index
    %c0_124 = arith.constant 0 : index
    %139 = vector.load %arg1[%c0_123, %c0_124] : memref<2x8xf32, #tpu.memory_space<vmem>>, vector<2x8xf32>
    %c5 = arith.constant 5 : index
    %c0_125 = arith.constant 0 : index
    %c0_126 = arith.constant 0 : index
    %140 = vector.load %arg4[%c5, %c0_125, %c0_126] : memref<6x8x32xf32, #tpu.memory_space<vmem>>, vector<1x8x32xf32>
    %141 = vector.shape_cast %140 : vector<1x8x32xf32> to vector<8x32xf32>
    %142 = arith.truncf %139 : vector<2x8xf32> to vector<2x8xbf16>
    %143 = arith.truncf %141 : vector<8x32xf32> to vector<8x32xbf16>
    %cst_127 = arith.constant dense<0.000000e+00> : vector<2x32xf32>
    %144 = tpu.matmul %142, %143, %cst_127 {dimension_numbers = #tpu.dot_dimension_numbers<[1], [0], [0], [1], [0, 0, 1, 1], [], []>} : vector<2x8xbf16>, vector<8x32xbf16>, vector<2x32xf32> -> vector<2x32xf32>
    %c5_128 = arith.constant 5 : index
    %c0_129 = arith.constant 0 : index
    %c0_130 = arith.constant 0 : index
    %145 = vector.load %arg5[%c5_128, %c0_129, %c0_130] : memref<6x1x32xf32, #tpu.memory_space<vmem>>, vector<1x1x32xf32>
    %146 = vector.shape_cast %145 : vector<1x1x32xf32> to vector<1x32xf32>
    %147 = vector.broadcast %146 : vector<1x32xf32> to vector<2x32xf32>
    %148 = arith.addf %144, %147 : vector<2x32xf32>
    %c5_131 = arith.constant 5 : index
    %c0_132 = arith.constant 0 : index
    %c0_133 = arith.constant 0 : index
    %149 = vector.load %arg9[%c5_131, %c0_132, %c0_133] : memref<6x2x32xf32, #tpu.memory_space<vmem>>, vector<1x2x32xf32>
    %150 = vector.shape_cast %149 : vector<1x2x32xf32> to vector<2x32xf32>
    %151 = vector.shape_cast %148 : vector<2x32xf32> to vector<1x2x32xf32>
    tpu.vector_store %arg9[%c5_131, %c0_132, %c0_133], %151 {strides = array<i32>} : memref<6x2x32xf32, #tpu.memory_space<vmem>>, vector<1x2x32xf32>,
    %c0_134 = arith.constant 0 : index
    %c0_135 = arith.constant 0 : index
    %152 = vector.load %arg1[%c0_134, %c0_135] : memref<2x8xf32, #tpu.memory_space<vmem>>, vector<2x8xf32>
    %c5_136 = arith.constant 5 : index
    %c0_137 = arith.constant 0 : index
    %c0_138 = arith.constant 0 : index
    %153 = vector.load %arg6[%c5_136, %c0_137, %c0_138] : memref<6x8x32xf32, #tpu.memory_space<vmem>>, vector<1x8x32xf32>
    %154 = vector.shape_cast %153 : vector<1x8x32xf32> to vector<8x32xf32>
    %155 = arith.truncf %152 : vector<2x8xf32> to vector<2x8xbf16>
    %156 = arith.truncf %154 : vector<8x32xf32> to vector<8x32xbf16>
    %cst_139 = arith.constant dense<0.000000e+00> : vector<2x32xf32>
    %157 = tpu.matmul %155, %156, %cst_139 {dimension_numbers = #tpu.dot_dimension_numbers<[1], [0], [0], [1], [0, 0, 1, 1], [], []>} : vector<2x8xbf16>, vector<8x32xbf16>, vector<2x32xf32> -> vector<2x32xf32>
    %c5_140 = arith.constant 5 : index
    %c0_141 = arith.constant 0 : index
    %c0_142 = arith.constant 0 : index
    %158 = vector.load %arg7[%c5_140, %c0_141, %c0_142] : memref<6x1x32xf32, #tpu.memory_space<vmem>>, vector<1x1x32xf32>
    %159 = vector.shape_cast %158 : vector<1x1x32xf32> to vector<1x32xf32>
    %160 = vector.broadcast %159 : vector<1x32xf32> to vector<2x32xf32>
    %161 = arith.addf %157, %160 : vector<2x32xf32>
    %c5_143 = arith.constant 5 : index
    %c0_144 = arith.constant 0 : index
    %c0_145 = arith.constant 0 : index
    %162 = vector.load %arg10[%c5_143, %c0_144, %c0_145] : memref<6x2x32xf32, #tpu.memory_space<vmem>>, vector<1x2x32xf32>
    %163 = vector.shape_cast %162 : vector<1x2x32xf32> to vector<2x32xf32>
    %164 = vector.shape_cast %161 : vector<2x32xf32> to vector<1x2x32xf32>
    tpu.vector_store %arg10[%c5_143, %c0_144, %c0_145], %164 {strides = array<i32>} : memref<6x2x32xf32, #tpu.memory_space<vmem>>, vector<1x2x32xf32>,
    return
  }
}

module attributes {stable_mosaic.version = 11 : i64} {
  func.func @stage_in_kernel(%arg0: i32, %arg1: i32, %arg2: memref<1x8x3xf32, #tpu.memory_space<vmem>>, %arg3: memref<2x32xf32, #tpu.memory_space<vmem>>, %arg4: memref<3x32xf32, #tpu.memory_space<vmem>>, %arg5: memref<1x32xf32, #tpu.memory_space<vmem>>, %arg6: memref<1x8x32xf32, #tpu.memory_space<vmem>>, %arg7: memref<1x32xf32, #tpu.memory_space<vmem>>, %arg8: memref<1x32xf32, #tpu.memory_space<vmem>>) attributes {dimension_semantics = [#tpu.dimension_semantics<arbitrary>, #tpu.dimension_semantics<arbitrary>], iteration_bounds = array<i64: 1, 2>, scalar_prefetch = 0 : i64, scratch_operands = 0 : i64, tpu.core_type = #tpu.core_type<tc>, window_params = [{transform_indices = @transform_0, window_bounds = array<i64: 1, 8, 3>}, {pipeline_mode = #tpu.pipeline_mode<synchronous>, transform_indices = @transform_1, window_bounds = array<i64: 2, 32>}, {pipeline_mode = #tpu.pipeline_mode<synchronous>, transform_indices = @transform_2, window_bounds = array<i64: 3, 32>}, {pipeline_mode = #tpu.pipeline_mode<synchronous>, transform_indices = @transform_3, window_bounds = array<i64: 1, 32>}, {transform_indices = @transform_4, window_bounds = array<i64: 1, 8, 32>}, {pipeline_mode = #tpu.pipeline_mode<synchronous>, transform_indices = @transform_5, window_bounds = array<i64: 1, 32>}, {pipeline_mode = #tpu.pipeline_mode<synchronous>, transform_indices = @transform_6, window_bounds = array<i64: 1, 32>}]} {
    %c0_i32 = arith.constant 0 : i32
    %0 = arith.cmpi eq, %arg0, %c0_i32 : i32
    %c0_i32_0 = arith.constant 0 : i32
    %1 = arith.cmpi eq, %arg1, %c0_i32_0 : i32
    %2 = arith.andi %0, %1 : i1
    %3 = arith.extui %2 : i1 to i32
    %c0_i32_1 = arith.constant 0 : i32
    %4 = arith.cmpi ne, %3, %c0_i32_1 : i32
    scf.if %4 {
      %cst_22 = arith.constant 0.000000e+00 : f32
      %32 = vector.broadcast %cst_22 : f32 to vector<1x32xf32>
      %c0_23 = arith.constant 0 : index
      %c0_24 = arith.constant 0 : index
      %33 = vector.load %arg7[%c0_23, %c0_24] : memref<1x32xf32, #tpu.memory_space<vmem>>, vector<1x32xf32>
      tpu.vector_store %arg7[%c0_23, %c0_24], %32 {strides = array<i32>} : memref<1x32xf32, #tpu.memory_space<vmem>>, vector<1x32xf32>,
      %cst_25 = arith.constant 0.000000e+00 : f32
      %34 = vector.broadcast %cst_25 : f32 to vector<1x32xf32>
      %c0_26 = arith.constant 0 : index
      %c0_27 = arith.constant 0 : index
      %35 = vector.load %arg8[%c0_26, %c0_27] : memref<1x32xf32, #tpu.memory_space<vmem>>, vector<1x32xf32>
      tpu.vector_store %arg8[%c0_26, %c0_27], %34 {strides = array<i32>} : memref<1x32xf32, #tpu.memory_space<vmem>>, vector<1x32xf32>,
    } else {
    }
    %c0 = arith.constant 0 : index
    %c0_2 = arith.constant 0 : index
    %c0_3 = arith.constant 0 : index
    %5 = vector.load %arg2[%c0, %c0_2, %c0_3] : memref<1x8x3xf32, #tpu.memory_space<vmem>>, vector<1x8x3xf32>
    %6 = vector.shape_cast %5 : vector<1x8x3xf32> to vector<8x3xf32>
    %c0_4 = arith.constant 0 : index
    %c0_5 = arith.constant 0 : index
    %7 = vector.load %arg4[%c0_4, %c0_5] : memref<3x32xf32, #tpu.memory_space<vmem>>, vector<3x32xf32>
    %8 = arith.truncf %6 : vector<8x3xf32> to vector<8x3xbf16>
    %9 = arith.truncf %7 : vector<3x32xf32> to vector<3x32xbf16>
    %cst = arith.constant dense<0.000000e+00> : vector<8x32xf32>
    %10 = tpu.matmul %8, %9, %cst {dimension_numbers = #tpu.dot_dimension_numbers<[1], [0], [0], [1], [0, 0, 1, 1], [], []>} : vector<8x3xbf16>, vector<3x32xbf16>, vector<8x32xf32> -> vector<8x32xf32>
    %c0_6 = arith.constant 0 : index
    %c0_7 = arith.constant 0 : index
    %11 = vector.load %arg5[%c0_6, %c0_7] : memref<1x32xf32, #tpu.memory_space<vmem>>, vector<1x32xf32>
    %12 = vector.broadcast %11 : vector<1x32xf32> to vector<8x32xf32>
    %13 = arith.addf %10, %12 : vector<8x32xf32>
    %14 = arith.index_cast %arg1 : i32 to index
    %c0_8 = arith.constant 0 : index
    %15 = vector.load %arg3[%14, %c0_8] : memref<2x32xf32, #tpu.memory_space<vmem>>, vector<1x32xf32>
    %16 = vector.broadcast %15 : vector<1x32xf32> to vector<8x32xf32>
    %17 = arith.addf %13, %16 : vector<8x32xf32>
    %c0_9 = arith.constant 0 : index
    %c0_10 = arith.constant 0 : index
    %c0_11 = arith.constant 0 : index
    %18 = vector.load %arg6[%c0_9, %c0_10, %c0_11] : memref<1x8x32xf32, #tpu.memory_space<vmem>>, vector<1x8x32xf32>
    %19 = vector.shape_cast %18 : vector<1x8x32xf32> to vector<8x32xf32>
    %20 = vector.shape_cast %17 : vector<8x32xf32> to vector<1x8x32xf32>
    tpu.vector_store %arg6[%c0_9, %c0_10, %c0_11], %20 {strides = array<i32>} : memref<1x8x32xf32, #tpu.memory_space<vmem>>, vector<1x8x32xf32>,
    %c0_12 = arith.constant 0 : index
    %c0_13 = arith.constant 0 : index
    %21 = vector.load %arg7[%c0_12, %c0_13] : memref<1x32xf32, #tpu.memory_space<vmem>>, vector<1x32xf32>
    %cst_14 = arith.constant dense<0.000000e+00> : vector<32xf32>
    %22 = vector.multi_reduction <add>, %17, %cst_14 [0] : vector<8x32xf32> to vector<32xf32>
    %23 = vector.shape_cast %22 : vector<32xf32> to vector<1x32xf32>
    %24 = arith.addf %21, %23 : vector<1x32xf32>
    %c0_15 = arith.constant 0 : index
    %c0_16 = arith.constant 0 : index
    %25 = vector.load %arg7[%c0_15, %c0_16] : memref<1x32xf32, #tpu.memory_space<vmem>>, vector<1x32xf32>
    tpu.vector_store %arg7[%c0_15, %c0_16], %24 {strides = array<i32>} : memref<1x32xf32, #tpu.memory_space<vmem>>, vector<1x32xf32>,
    %c0_17 = arith.constant 0 : index
    %c0_18 = arith.constant 0 : index
    %26 = vector.load %arg8[%c0_17, %c0_18] : memref<1x32xf32, #tpu.memory_space<vmem>>, vector<1x32xf32>
    %27 = arith.mulf %17, %17 : vector<8x32xf32>
    %cst_19 = arith.constant dense<0.000000e+00> : vector<32xf32>
    %28 = vector.multi_reduction <add>, %27, %cst_19 [0] : vector<8x32xf32> to vector<32xf32>
    %29 = vector.shape_cast %28 : vector<32xf32> to vector<1x32xf32>
    %30 = arith.addf %26, %29 : vector<1x32xf32>
    %c0_20 = arith.constant 0 : index
    %c0_21 = arith.constant 0 : index
    %31 = vector.load %arg8[%c0_20, %c0_21] : memref<1x32xf32, #tpu.memory_space<vmem>>, vector<1x32xf32>
    tpu.vector_store %arg8[%c0_20, %c0_21], %30 {strides = array<i32>} : memref<1x32xf32, #tpu.memory_space<vmem>>, vector<1x32xf32>,
    return
  }
  func.func @transform_0(%arg0: i32, %arg1: i32) -> (i32, i32, i32) {
    %c0_i32 = arith.constant 0 : i32
    %c0_i32_0 = arith.constant 0 : i32
    return %arg1, %arg0, %c0_i32 : i32, i32, i32
  }
  func.func @transform_1(%arg0: i32, %arg1: i32) -> (i32, i32) {
    %c0_i32 = arith.constant 0 : i32
    %c0_i32_0 = arith.constant 0 : i32
    %c0_i32_1 = arith.constant 0 : i32
    return %c0_i32, %c0_i32_0 : i32, i32
  }
  func.func @transform_2(%arg0: i32, %arg1: i32) -> (i32, i32) {
    %c0_i32 = arith.constant 0 : i32
    %c0_i32_0 = arith.constant 0 : i32
    %c0_i32_1 = arith.constant 0 : i32
    return %c0_i32, %c0_i32_0 : i32, i32
  }
  func.func @transform_3(%arg0: i32, %arg1: i32) -> (i32, i32) {
    %c0_i32 = arith.constant 0 : i32
    %c0_i32_0 = arith.constant 0 : i32
    %c0_i32_1 = arith.constant 0 : i32
    return %c0_i32, %c0_i32_0 : i32, i32
  }
  func.func @transform_4(%arg0: i32, %arg1: i32) -> (i32, i32, i32) {
    %c0_i32 = arith.constant 0 : i32
    %c0_i32_0 = arith.constant 0 : i32
    return %arg1, %arg0, %c0_i32 : i32, i32, i32
  }
  func.func @transform_5(%arg0: i32, %arg1: i32) -> (i32, i32) {
    %c0_i32 = arith.constant 0 : i32
    %c0_i32_0 = arith.constant 0 : i32
    %c0_i32_1 = arith.constant 0 : i32
    return %c0_i32, %c0_i32_0 : i32, i32
  }
  func.func @transform_6(%arg0: i32, %arg1: i32) -> (i32, i32) {
    %c0_i32 = arith.constant 0 : i32
    %c0_i32_0 = arith.constant 0 : i32
    %c0_i32_1 = arith.constant 0 : i32
    return %c0_i32, %c0_i32_0 : i32, i32
  }
}

module attributes {stable_mosaic.version = 11 : i64} {
  func.func @stage_mid_kernel(%arg0: i32, %arg1: i32, %arg2: memref<1x8x32xf32, #tpu.memory_space<vmem>>, %arg3: memref<2x32xf32, #tpu.memory_space<vmem>>, %arg4: memref<2x32xf32, #tpu.memory_space<vmem>>, %arg5: memref<1x32xf32, #tpu.memory_space<vmem>>, %arg6: memref<1x32xf32, #tpu.memory_space<vmem>>, %arg7: memref<32x32xf32, #tpu.memory_space<vmem>>, %arg8: memref<1x32xf32, #tpu.memory_space<vmem>>, %arg9: memref<1x8x32xf32, #tpu.memory_space<vmem>>, %arg10: memref<1x32xf32, #tpu.memory_space<vmem>>, %arg11: memref<1x32xf32, #tpu.memory_space<vmem>>) attributes {dimension_semantics = [#tpu.dimension_semantics<arbitrary>, #tpu.dimension_semantics<arbitrary>], iteration_bounds = array<i64: 1, 2>, scalar_prefetch = 0 : i64, scratch_operands = 0 : i64, tpu.core_type = #tpu.core_type<tc>, window_params = [{transform_indices = @transform_0, window_bounds = array<i64: 1, 8, 32>}, {pipeline_mode = #tpu.pipeline_mode<synchronous>, transform_indices = @transform_1, window_bounds = array<i64: 2, 32>}, {pipeline_mode = #tpu.pipeline_mode<synchronous>, transform_indices = @transform_2, window_bounds = array<i64: 2, 32>}, {pipeline_mode = #tpu.pipeline_mode<synchronous>, transform_indices = @transform_3, window_bounds = array<i64: 1, 32>}, {pipeline_mode = #tpu.pipeline_mode<synchronous>, transform_indices = @transform_4, window_bounds = array<i64: 1, 32>}, {pipeline_mode = #tpu.pipeline_mode<synchronous>, transform_indices = @transform_5, window_bounds = array<i64: 32, 32>}, {pipeline_mode = #tpu.pipeline_mode<synchronous>, transform_indices = @transform_6, window_bounds = array<i64: 1, 32>}, {transform_indices = @transform_7, window_bounds = array<i64: 1, 8, 32>}, {pipeline_mode = #tpu.pipeline_mode<synchronous>, transform_indices = @transform_8, window_bounds = array<i64: 1, 32>}, {pipeline_mode = #tpu.pipeline_mode<synchronous>, transform_indices = @transform_9, window_bounds = array<i64: 1, 32>}]} {
    %c0_i32 = arith.constant 0 : i32
    %0 = arith.cmpi eq, %arg0, %c0_i32 : i32
    %c0_i32_0 = arith.constant 0 : i32
    %1 = arith.cmpi eq, %arg1, %c0_i32_0 : i32
    %2 = arith.andi %0, %1 : i1
    %3 = arith.extui %2 : i1 to i32
    %c0_i32_1 = arith.constant 0 : i32
    %4 = arith.cmpi ne, %3, %c0_i32_1 : i32
    scf.if %4 {
      %cst_31 = arith.constant 0.000000e+00 : f32
      %53 = vector.broadcast %cst_31 : f32 to vector<1x32xf32>
      %c0_32 = arith.constant 0 : index
      %c0_33 = arith.constant 0 : index
      %54 = vector.load %arg10[%c0_32, %c0_33] : memref<1x32xf32, #tpu.memory_space<vmem>>, vector<1x32xf32>
      tpu.vector_store %arg10[%c0_32, %c0_33], %53 {strides = array<i32>} : memref<1x32xf32, #tpu.memory_space<vmem>>, vector<1x32xf32>,
      %cst_34 = arith.constant 0.000000e+00 : f32
      %55 = vector.broadcast %cst_34 : f32 to vector<1x32xf32>
      %c0_35 = arith.constant 0 : index
      %c0_36 = arith.constant 0 : index
      %56 = vector.load %arg11[%c0_35, %c0_36] : memref<1x32xf32, #tpu.memory_space<vmem>>, vector<1x32xf32>
      tpu.vector_store %arg11[%c0_35, %c0_36], %55 {strides = array<i32>} : memref<1x32xf32, #tpu.memory_space<vmem>>, vector<1x32xf32>,
    } else {
    }
    %c0 = arith.constant 0 : index
    %c0_2 = arith.constant 0 : index
    %5 = vector.load %arg5[%c0, %c0_2] : memref<1x32xf32, #tpu.memory_space<vmem>>, vector<1x32xf32>
    %cst = arith.constant 6.250000e-02 : f32
    %6 = vector.broadcast %cst : f32 to vector<1x32xf32>
    %7 = arith.mulf %5, %6 : vector<1x32xf32>
    %c0_3 = arith.constant 0 : index
    %c0_4 = arith.constant 0 : index
    %8 = vector.load %arg6[%c0_3, %c0_4] : memref<1x32xf32, #tpu.memory_space<vmem>>, vector<1x32xf32>
    %cst_5 = arith.constant 6.250000e-02 : f32
    %9 = vector.broadcast %cst_5 : f32 to vector<1x32xf32>
    %10 = arith.mulf %8, %9 : vector<1x32xf32>
    %11 = arith.mulf %7, %7 : vector<1x32xf32>
    %12 = arith.subf %10, %11 : vector<1x32xf32>
    %cst_6 = arith.constant 9.99999974E-6 : f32
    %13 = vector.broadcast %cst_6 : f32 to vector<1x32xf32>
    %14 = arith.addf %12, %13 : vector<1x32xf32>
    %15 = math.rsqrt %14 : vector<1x32xf32>
    %16 = arith.index_cast %arg1 : i32 to index
    %c0_7 = arith.constant 0 : index
    %17 = vector.load %arg3[%16, %c0_7] : memref<2x32xf32, #tpu.memory_space<vmem>>, vector<1x32xf32>
    %18 = arith.index_cast %arg1 : i32 to index
    %c0_8 = arith.constant 0 : index
    %19 = vector.load %arg4[%18, %c0_8] : memref<2x32xf32, #tpu.memory_space<vmem>>, vector<1x32xf32>
    %c0_9 = arith.constant 0 : index
    %c0_10 = arith.constant 0 : index
    %c0_11 = arith.constant 0 : index
    %20 = vector.load %arg2[%c0_9, %c0_10, %c0_11] : memref<1x8x32xf32, #tpu.memory_space<vmem>>, vector<1x8x32xf32>
    %21 = vector.shape_cast %20 : vector<1x8x32xf32> to vector<8x32xf32>
    %22 = vector.broadcast %7 : vector<1x32xf32> to vector<8x32xf32>
    %23 = arith.subf %21, %22 : vector<8x32xf32>
    %24 = vector.broadcast %15 : vector<1x32xf32> to vector<8x32xf32>
    %25 = arith.mulf %23, %24 : vector<8x32xf32>
    %26 = vector.broadcast %17 : vector<1x32xf32> to vector<8x32xf32>
    %27 = arith.mulf %26, %25 : vector<8x32xf32>
    %28 = vector.broadcast %19 : vector<1x32xf32> to vector<8x32xf32>
    %29 = arith.addf %27, %28 : vector<8x32xf32>
    %cst_12 = arith.constant 0.000000e+00 : f32
    %30 = vector.broadcast %cst_12 : f32 to vector<8x32xf32>
    %31 = arith.maximumf %29, %30 : vector<8x32xf32>
    %c0_13 = arith.constant 0 : index
    %c0_14 = arith.constant 0 : index
    %32 = vector.load %arg7[%c0_13, %c0_14] : memref<32x32xf32, #tpu.memory_space<vmem>>, vector<32x32xf32>
    %33 = arith.truncf %31 : vector<8x32xf32> to vector<8x32xbf16>
    %34 = arith.truncf %32 : vector<32x32xf32> to vector<32x32xbf16>
    %cst_15 = arith.constant dense<0.000000e+00> : vector<8x32xf32>
    %35 = tpu.matmul %33, %34, %cst_15 {dimension_numbers = #tpu.dot_dimension_numbers<[1], [0], [0], [1], [0, 0, 1, 1], [], []>} : vector<8x32xbf16>, vector<32x32xbf16>, vector<8x32xf32> -> vector<8x32xf32>
    %c0_16 = arith.constant 0 : index
    %c0_17 = arith.constant 0 : index
    %36 = vector.load %arg8[%c0_16, %c0_17] : memref<1x32xf32, #tpu.memory_space<vmem>>, vector<1x32xf32>
    %37 = vector.broadcast %36 : vector<1x32xf32> to vector<8x32xf32>
    %38 = arith.addf %35, %37 : vector<8x32xf32>
    %c0_18 = arith.constant 0 : index
    %c0_19 = arith.constant 0 : index
    %c0_20 = arith.constant 0 : index
    %39 = vector.load %arg9[%c0_18, %c0_19, %c0_20] : memref<1x8x32xf32, #tpu.memory_space<vmem>>, vector<1x8x32xf32>
    %40 = vector.shape_cast %39 : vector<1x8x32xf32> to vector<8x32xf32>
    %41 = vector.shape_cast %38 : vector<8x32xf32> to vector<1x8x32xf32>
    tpu.vector_store %arg9[%c0_18, %c0_19, %c0_20], %41 {strides = array<i32>} : memref<1x8x32xf32, #tpu.memory_space<vmem>>, vector<1x8x32xf32>,
    %c0_21 = arith.constant 0 : index
    %c0_22 = arith.constant 0 : index
    %42 = vector.load %arg10[%c0_21, %c0_22] : memref<1x32xf32, #tpu.memory_space<vmem>>, vector<1x32xf32>
    %cst_23 = arith.constant dense<0.000000e+00> : vector<32xf32>
    %43 = vector.multi_reduction <add>, %38, %cst_23 [0] : vector<8x32xf32> to vector<32xf32>
    %44 = vector.shape_cast %43 : vector<32xf32> to vector<1x32xf32>
    %45 = arith.addf %42, %44 : vector<1x32xf32>
    %c0_24 = arith.constant 0 : index
    %c0_25 = arith.constant 0 : index
    %46 = vector.load %arg10[%c0_24, %c0_25] : memref<1x32xf32, #tpu.memory_space<vmem>>, vector<1x32xf32>
    tpu.vector_store %arg10[%c0_24, %c0_25], %45 {strides = array<i32>} : memref<1x32xf32, #tpu.memory_space<vmem>>, vector<1x32xf32>,
    %c0_26 = arith.constant 0 : index
    %c0_27 = arith.constant 0 : index
    %47 = vector.load %arg11[%c0_26, %c0_27] : memref<1x32xf32, #tpu.memory_space<vmem>>, vector<1x32xf32>
    %48 = arith.mulf %38, %38 : vector<8x32xf32>
    %cst_28 = arith.constant dense<0.000000e+00> : vector<32xf32>
    %49 = vector.multi_reduction <add>, %48, %cst_28 [0] : vector<8x32xf32> to vector<32xf32>
    %50 = vector.shape_cast %49 : vector<32xf32> to vector<1x32xf32>
    %51 = arith.addf %47, %50 : vector<1x32xf32>
    %c0_29 = arith.constant 0 : index
    %c0_30 = arith.constant 0 : index
    %52 = vector.load %arg11[%c0_29, %c0_30] : memref<1x32xf32, #tpu.memory_space<vmem>>, vector<1x32xf32>
    tpu.vector_store %arg11[%c0_29, %c0_30], %51 {strides = array<i32>} : memref<1x32xf32, #tpu.memory_space<vmem>>, vector<1x32xf32>,
    return
  }
  func.func @transform_0(%arg0: i32, %arg1: i32) -> (i32, i32, i32) {
    %c0_i32 = arith.constant 0 : i32
    %c0_i32_0 = arith.constant 0 : i32
    return %arg1, %arg0, %c0_i32 : i32, i32, i32
  }
  func.func @transform_1(%arg0: i32, %arg1: i32) -> (i32, i32) {
    %c0_i32 = arith.constant 0 : i32
    %c0_i32_0 = arith.constant 0 : i32
    %c0_i32_1 = arith.constant 0 : i32
    return %c0_i32, %c0_i32_0 : i32, i32
  }
  func.func @transform_2(%arg0: i32, %arg1: i32) -> (i32, i32) {
    %c0_i32 = arith.constant 0 : i32
    %c0_i32_0 = arith.constant 0 : i32
    %c0_i32_1 = arith.constant 0 : i32
    return %c0_i32, %c0_i32_0 : i32, i32
  }
  func.func @transform_3(%arg0: i32, %arg1: i32) -> (i32, i32) {
    %c0_i32 = arith.constant 0 : i32
    %c0_i32_0 = arith.constant 0 : i32
    %c0_i32_1 = arith.constant 0 : i32
    return %c0_i32, %c0_i32_0 : i32, i32
  }
  func.func @transform_4(%arg0: i32, %arg1: i32) -> (i32, i32) {
    %c0_i32 = arith.constant 0 : i32
    %c0_i32_0 = arith.constant 0 : i32
    %c0_i32_1 = arith.constant 0 : i32
    return %c0_i32, %c0_i32_0 : i32, i32
  }
  func.func @transform_5(%arg0: i32, %arg1: i32) -> (i32, i32) {
    %c0_i32 = arith.constant 0 : i32
    %c0_i32_0 = arith.constant 0 : i32
    %c0_i32_1 = arith.constant 0 : i32
    return %c0_i32, %c0_i32_0 : i32, i32
  }
  func.func @transform_6(%arg0: i32, %arg1: i32) -> (i32, i32) {
    %c0_i32 = arith.constant 0 : i32
    %c0_i32_0 = arith.constant 0 : i32
    %c0_i32_1 = arith.constant 0 : i32
    return %c0_i32, %c0_i32_0 : i32, i32
  }
  func.func @transform_7(%arg0: i32, %arg1: i32) -> (i32, i32, i32) {
    %c0_i32 = arith.constant 0 : i32
    %c0_i32_0 = arith.constant 0 : i32
    return %arg1, %arg0, %c0_i32 : i32, i32, i32
  }
  func.func @transform_8(%arg0: i32, %arg1: i32) -> (i32, i32) {
    %c0_i32 = arith.constant 0 : i32
    %c0_i32_0 = arith.constant 0 : i32
    %c0_i32_1 = arith.constant 0 : i32
    return %c0_i32, %c0_i32_0 : i32, i32
  }
  func.func @transform_9(%arg0: i32, %arg1: i32) -> (i32, i32) {
    %c0_i32 = arith.constant 0 : i32
    %c0_i32_0 = arith.constant 0 : i32
    %c0_i32_1 = arith.constant 0 : i32
    return %c0_i32, %c0_i32_0 : i32, i32
  }
}

module attributes {stable_mosaic.version = 11 : i64} {
  func.func @stage_out_kernel(%arg0: i32, %arg1: i32, %arg2: memref<1x8x32xf32, #tpu.memory_space<vmem>>, %arg3: memref<2x32xf32, #tpu.memory_space<vmem>>, %arg4: memref<2x32xf32, #tpu.memory_space<vmem>>, %arg5: memref<1x32xf32, #tpu.memory_space<vmem>>, %arg6: memref<1x32xf32, #tpu.memory_space<vmem>>, %arg7: memref<1x32xf32, #tpu.memory_space<vmem>>, %arg8: memref<1x1xf32, #tpu.memory_space<vmem>>, %arg9: memref<1x2x8xf32, #tpu.memory_space<vmem>>) attributes {dimension_semantics = [#tpu.dimension_semantics<arbitrary>, #tpu.dimension_semantics<arbitrary>], iteration_bounds = array<i64: 1, 2>, scalar_prefetch = 0 : i64, scratch_operands = 0 : i64, tpu.core_type = #tpu.core_type<tc>, window_params = [{transform_indices = @transform_0, window_bounds = array<i64: 1, 8, 32>}, {pipeline_mode = #tpu.pipeline_mode<synchronous>, transform_indices = @transform_1, window_bounds = array<i64: 2, 32>}, {pipeline_mode = #tpu.pipeline_mode<synchronous>, transform_indices = @transform_2, window_bounds = array<i64: 2, 32>}, {pipeline_mode = #tpu.pipeline_mode<synchronous>, transform_indices = @transform_3, window_bounds = array<i64: 1, 32>}, {pipeline_mode = #tpu.pipeline_mode<synchronous>, transform_indices = @transform_4, window_bounds = array<i64: 1, 32>}, {pipeline_mode = #tpu.pipeline_mode<synchronous>, transform_indices = @transform_5, window_bounds = array<i64: 1, 32>}, {pipeline_mode = #tpu.pipeline_mode<synchronous>, transform_indices = @transform_6, window_bounds = array<i64: 1, 1>}, {transform_indices = @transform_7, window_bounds = array<i64: 1, 2, 8>}]} {
    %c0 = arith.constant 0 : index
    %c0_0 = arith.constant 0 : index
    %0 = vector.load %arg5[%c0, %c0_0] : memref<1x32xf32, #tpu.memory_space<vmem>>, vector<1x32xf32>
    %cst = arith.constant 6.250000e-02 : f32
    %1 = vector.broadcast %cst : f32 to vector<1x32xf32>
    %2 = arith.mulf %0, %1 : vector<1x32xf32>
    %c0_1 = arith.constant 0 : index
    %c0_2 = arith.constant 0 : index
    %3 = vector.load %arg6[%c0_1, %c0_2] : memref<1x32xf32, #tpu.memory_space<vmem>>, vector<1x32xf32>
    %cst_3 = arith.constant 6.250000e-02 : f32
    %4 = vector.broadcast %cst_3 : f32 to vector<1x32xf32>
    %5 = arith.mulf %3, %4 : vector<1x32xf32>
    %6 = arith.mulf %2, %2 : vector<1x32xf32>
    %7 = arith.subf %5, %6 : vector<1x32xf32>
    %cst_4 = arith.constant 9.99999974E-6 : f32
    %8 = vector.broadcast %cst_4 : f32 to vector<1x32xf32>
    %9 = arith.addf %7, %8 : vector<1x32xf32>
    %10 = math.rsqrt %9 : vector<1x32xf32>
    %11 = arith.index_cast %arg1 : i32 to index
    %c0_5 = arith.constant 0 : index
    %12 = vector.load %arg3[%11, %c0_5] : memref<2x32xf32, #tpu.memory_space<vmem>>, vector<1x32xf32>
    %13 = arith.index_cast %arg1 : i32 to index
    %c0_6 = arith.constant 0 : index
    %14 = vector.load %arg4[%13, %c0_6] : memref<2x32xf32, #tpu.memory_space<vmem>>, vector<1x32xf32>
    %c0_7 = arith.constant 0 : index
    %c0_8 = arith.constant 0 : index
    %c0_9 = arith.constant 0 : index
    %15 = vector.load %arg2[%c0_7, %c0_8, %c0_9] : memref<1x8x32xf32, #tpu.memory_space<vmem>>, vector<1x8x32xf32>
    %16 = vector.shape_cast %15 : vector<1x8x32xf32> to vector<8x32xf32>
    %17 = vector.broadcast %2 : vector<1x32xf32> to vector<8x32xf32>
    %18 = arith.subf %16, %17 : vector<8x32xf32>
    %19 = vector.broadcast %10 : vector<1x32xf32> to vector<8x32xf32>
    %20 = arith.mulf %18, %19 : vector<8x32xf32>
    %21 = vector.broadcast %12 : vector<1x32xf32> to vector<8x32xf32>
    %22 = arith.mulf %21, %20 : vector<8x32xf32>
    %23 = vector.broadcast %14 : vector<1x32xf32> to vector<8x32xf32>
    %24 = arith.addf %22, %23 : vector<8x32xf32>
    %cst_10 = arith.constant 0.000000e+00 : f32
    %25 = vector.broadcast %cst_10 : f32 to vector<8x32xf32>
    %26 = arith.maximumf %24, %25 : vector<8x32xf32>
    %c0_11 = arith.constant 0 : index
    %c0_12 = arith.constant 0 : index
    %27 = vector.load %arg7[%c0_11, %c0_12] : memref<1x32xf32, #tpu.memory_space<vmem>>, vector<1x32xf32>
    %28 = arith.truncf %27 : vector<1x32xf32> to vector<1x32xbf16>
    %29 = arith.truncf %26 : vector<8x32xf32> to vector<8x32xbf16>
    %cst_13 = arith.constant dense<0.000000e+00> : vector<1x8xf32>
    %30 = tpu.matmul %28, %29, %cst_13 {dimension_numbers = #tpu.dot_dimension_numbers<[1], [1], [0], [0], [0, 0, 1, 0], [], []>} : vector<1x32xbf16>, vector<8x32xbf16>, vector<1x8xf32> -> vector<1x8xf32>
    %c0_14 = arith.constant 0 : index
    %c0_15 = arith.constant 0 : index
    %31 = vector.load %arg8[%c0_14, %c0_15] : memref<1x1xf32, #tpu.memory_space<vmem>>, vector<1x1xf32>
    %32 = vector.broadcast %31 : vector<1x1xf32> to vector<1x8xf32>
    %33 = arith.addf %30, %32 : vector<1x8xf32>
    %c0_16 = arith.constant 0 : index
    %34 = arith.index_cast %arg1 : i32 to index
    %c0_17 = arith.constant 0 : index
    %35 = vector.load %arg9[%c0_16, %34, %c0_17] : memref<1x2x8xf32, #tpu.memory_space<vmem>>, vector<1x1x8xf32>
    %36 = vector.shape_cast %35 : vector<1x1x8xf32> to vector<1x8xf32>
    %37 = vector.shape_cast %33 : vector<1x8xf32> to vector<1x1x8xf32>
    tpu.vector_store %arg9[%c0_16, %34, %c0_17], %37 {strides = array<i32>} : memref<1x2x8xf32, #tpu.memory_space<vmem>>, vector<1x1x8xf32>,
    return
  }
  func.func @transform_0(%arg0: i32, %arg1: i32) -> (i32, i32, i32) {
    %c0_i32 = arith.constant 0 : i32
    %c0_i32_0 = arith.constant 0 : i32
    return %arg1, %arg0, %c0_i32 : i32, i32, i32
  }
  func.func @transform_1(%arg0: i32, %arg1: i32) -> (i32, i32) {
    %c0_i32 = arith.constant 0 : i32
    %c0_i32_0 = arith.constant 0 : i32
    %c0_i32_1 = arith.constant 0 : i32
    return %c0_i32, %c0_i32_0 : i32, i32
  }
  func.func @transform_2(%arg0: i32, %arg1: i32) -> (i32, i32) {
    %c0_i32 = arith.constant 0 : i32
    %c0_i32_0 = arith.constant 0 : i32
    %c0_i32_1 = arith.constant 0 : i32
    return %c0_i32, %c0_i32_0 : i32, i32
  }
  func.func @transform_3(%arg0: i32, %arg1: i32) -> (i32, i32) {
    %c0_i32 = arith.constant 0 : i32
    %c0_i32_0 = arith.constant 0 : i32
    %c0_i32_1 = arith.constant 0 : i32
    return %c0_i32, %c0_i32_0 : i32, i32
  }
  func.func @transform_4(%arg0: i32, %arg1: i32) -> (i32, i32) {
    %c0_i32 = arith.constant 0 : i32
    %c0_i32_0 = arith.constant 0 : i32
    %c0_i32_1 = arith.constant 0 : i32
    return %c0_i32, %c0_i32_0 : i32, i32
  }
  func.func @transform_5(%arg0: i32, %arg1: i32) -> (i32, i32) {
    %c0_i32 = arith.constant 0 : i32
    %c0_i32_0 = arith.constant 0 : i32
    %c0_i32_1 = arith.constant 0 : i32
    return %c0_i32, %c0_i32_0 : i32, i32
  }
  func.func @transform_6(%arg0: i32, %arg1: i32) -> (i32, i32) {
    %c0_i32 = arith.constant 0 : i32
    %c0_i32_0 = arith.constant 0 : i32
    %c0_i32_1 = arith.constant 0 : i32
    return %c0_i32, %c0_i32_0 : i32, i32
  }
  func.func @transform_7(%arg0: i32, %arg1: i32) -> (i32, i32, i32) {
    %c0_i32 = arith.constant 0 : i32
    %c0_i32_0 = arith.constant 0 : i32
    %c0_i32_1 = arith.constant 0 : i32
    return %arg0, %c0_i32, %c0_i32_0 : i32, i32, i32
  }
}

</mosaic_0001>

<bundles_post_ra>
// kernel: decoder_forward.9
= control target key start
LH: loop header
LB: loop body
LE: loop exit
PB: predicated region body
PF: predicated region fallthrough
CT: control target
= control target key end

     0   :  { %s576_s21 = smov 0   ;;  %s578_s22 = smov 0   ;;  %s645_s0 = inlined_call_operand.vmem [shape: f32[2,8,3], index: 0, kind: input, shape index: {}]   ;;  %s646_s1 = inlined_call_operand.vmem [shape: f32[2,32], index: 1, kind: input, shape index: {}]   ;;  %s647_s2 = inlined_call_operand.vmem [shape: f32[3,32], index: 2, kind: input, shape index: {}]   ;;  %s648_s3 = inlined_call_operand.vmem [shape: f32[1,32], index: 3, kind: input, shape index: {}]   ;;  %s649_s4 = inlined_call_operand.vmem [shape: f32[2,8,32], index: 4, kind: output, shape index: {0}]   ;;  %s650_s5 = inlined_call_operand.vmem [shape: f32[1,32], index: 5, kind: output, shape index: {1}]   ;;  %s651_s6 = inlined_call_operand.vmem [shape: f32[1,32], index: 6, kind: output, shape index: {2}]  }
   0x1   :  { %s580_s23 = smov 0  }
   0x2 LB: > { %s26_s24 = sadd.s32 1, %s531_s22  ;;  %p467_p0 = scmp.ge.s32.totalorder %s535_s23, 1  ;;  %s535_s23 = sphi %s580_s23, %s17_s23   ;;  %s531_s22 = sphi %s578_s22, %s653_s22   ;;  %s527_s21 = sphi %s576_s21, %s652_s21  }
   0x3   : > { %p27_p1 = scmp.ge.s32.totalorder %s26_s24, 2  ;;  %p225_p2 = scmp.lt.s32.totalorder %s535_s23, 3 }
   0x5   : > { %s655_s24 = smov (%p27_p1, %s26_s24), 0  ;;  %p226_p3 = pnand %p467_p0, %p225_p2 }
   0x6   : > { %p259_p4 = scmp.lt.s32.totalorder (!%p226_p3), %s527_s21, 1  ;;  %p275_p5 = scmp.eq.s32.totalorder (!%p226_p3), %s527_s21, 0 }
   0x7   : > { %229 = sbr.rel (%p226_p3) target bundleno = 264 (0x108), region = 36 }
   0xe   : > { %s260_s25 = scalar_select %p259_p4, %s527_s21, 1 }
   0xf   : > { %279 = sbr.rel (!%p275_p5) target bundleno = 22 (0x16), region = 40  ;;  %vm280_vm0 = vcmask (%p275_p5), 253952   ;;  %v537_v0 = vmov (%p275_p5), 0.0  }
  0x10   : > { %s468_s26 = sshll.u32 %s260_s25, 3  ;;  %281 = vst.msk [vmem:[%s650_s5] sm:$0x1] (%p275_p5), %vm280_vm0, %v537_v0  ;;  %282 = vst.msk [vmem:[%s651_s6] sm:$0x1] (%p275_p5), %vm280_vm0, %v537_v0 }
  0x11   : > { %s265_s29 = scalar_lea.vmem %s645_s0, %s468_s26  ;;  %s605_s8 = scalar_lea.vmem %s649_s4, %s468_s26 }
  0x16 PF: > { %v284_v1 = vld [vmem:[%s647_s2] sm:$0x7]  ;;  %vm298_vm1 = vcmask 1040384   ;;  %vm299_vm2 = vcmask 1041408   ;;  %v538_v2 = vmov 0.0   ;;  %v539_v4 = vmov 65535   ;;  %s345_s17 = scalar_lea.vmem %s646_s1, %s527_s21 }
  0x17   : > { %479 = vmatprep.subr.bf16.mxu0 %v538_v2  ;;  %v286_v3 = vpack.c.bf16 %v284_v1, %v284_v1  ;;  %v300_v5 = vsel %vm298_vm1, 4294967295, %v539_v4  ;;  %v283_v6 = vld [vmem:[%s265_s29] sm:$0xff]  ;;  %vm540_vm3 = vmmov 0   ;;  %vm294_vm4 = vcmask 23552  }
  0x18   : > { %v301_v7 = vsel %vm299_vm2, %v300_v5, 0  ;;  %481 = vmatprep.mubr.msk.bf16.mxu0 %vm540_vm3, %v538_v2  ;;  %v285_v9 = vpack.c.bf16 %v283_v6, %v283_v6  ;;  %v471_v10 = vld [vmem:[%s648_s3] ss:$0 sm:$0xff]  ;;  %vm352_vm5 = vcmask 261120   ;;  %vm363_vm6 = vcmask 253952  }
  0x19   : > { %v303_v8 = vand.u32 %v301_v7, %v286_v3  ;;  %v473_v12 = vld [vmem:[%s345_s17] ss:$0 sm:$0xff] }
  0x1a   : > { %v354_v30 = vld [vmem:[%s650_s5] sm:$0x1] }
  0x1b   : > { %480 = vmatpush3.bf16.msra.mxu0 %v303_v8  ;;  %v365_v33 = vld [vmem:[%s651_s6] sm:$0x1] }
  0x1e   : > { %482 = vmatmul.mubr.msk.bf16.vlgmr.msra.gmra.mrb[0].mxu0 %vm294_vm4, %v285_v9 }
  0xf1   : > { %v339_v11 = vpop.f32.mrb[0].mxu0 }
  0xf2   : > { %v340_v13 = vadd.f32 %v471_v10, %v339_v11  ;;  %v483_v14 = vpop.f32.mrb[1].mxu0 }
  0xf3   : > { %v342_v15 = vpop.f32.mrb[2].mxu0 }
  0xf4   : > { %v351_v16 = vadd.f32 %v473_v12, %v340_v13  ;;  %v484_v17 = vpop.f32.mrb[3].mxu0 }
  0xf6   : > { %353 = vst.msk [vmem:[%s605_s8] sm:$0xff] %vm352_vm5, %v351_v16  ;;  %v355_v18 = vsel %vm352_vm5, %v351_v16, 0.0  ;;  %v366_v19 = vmul.f32 %v351_v16, %v351_v16 }
  0xf7   : > { %v356_v20 = vrot.slane %v355_v18, 4 }
  0xf8   : > { %v367_v21 = vsel %vm352_vm5, %v366_v19, 0.0 }
  0xf9   : > { %v357_v22 = vadd.f32 %v356_v20, %v355_v18  ;;  %v368_v23 = vrot.slane %v367_v21, 4 }
  0xfb   : > { %v358_v24 = vrot.slane %v357_v22, 2  ;;  %v369_v25 = vadd.f32 %v368_v23, %v367_v21 }
  0xfd   : > { %v359_v26 = vadd.f32 %v358_v24, %v357_v22  ;;  %v370_v27 = vrot.slane %v369_v25, 2 }
  0xff   : > { %v360_v28 = vrot.slane %v359_v26, 1  ;;  %v371_v29 = vadd.f32 %v370_v27, %v369_v25 }
 0x101   : > { %v361_v31 = vadd.f32 %v360_v28, %v359_v26  ;;  %v372_v32 = vrot.slane %v371_v29, 1 }
 0x103   : > { %v362_v34 = vadd.f32 %v361_v31, %v354_v30  ;;  %v373_v35 = vadd.f32 %v372_v32, %v371_v29 }
 0x105   : > { %364 = vst.msk [vmem:[%s650_s5] sm:$0x1] %vm363_vm6, %v362_v34  ;;  %v374_v36 = vadd.f32 %v373_v35, %v365_v33 }
 0x107   : > { %375 = vst.msk [vmem:[%s651_s6] sm:$0x1] %vm363_vm6, %v374_v36 }
 0x108 PF: > { %s17_s23 = sadd.s32 1, %s535_s23   ;;  %s652_s21 = smov %s531_s22 }
 0x109   : > { %p14_p6 = scmp.ge.s32.totalorder %s17_s23, 4   ;;  %s653_s22 = smov %s655_s24 }
 0x10b   :  { %16 = sbr.rel (!%p14_p6) target bundleno = 2 (0x2), region = 87 }

// kernel: decoder_forward.10
= control target key start
LH: loop header
LB: loop body
LE: loop exit
PB: predicated region body
PF: predicated region fallthrough
CT: control target
= control target key end

     0   :  { %s703_s30 = smov 0   ;;  %s705_s10 = smov 0   ;;  %s794_s0 = inlined_call_operand.vmem [shape: f32[2,8,32], index: 0, kind: input, shape index: {}]   ;;  %s795_s1 = inlined_call_operand.vmem [shape: f32[2,32], index: 1, kind: input, shape index: {}]   ;;  %s796_s2 = inlined_call_operand.vmem [shape: f32[2,32], index: 2, kind: input, shape index: {}]   ;;  %s797_s3 = inlined_call_operand.vmem [shape: f32[1,32], index: 3, kind: input, shape index: {}]   ;;  %s798_s4 = inlined_call_operand.vmem [shape: f32[1,32], index: 4, kind: input, shape index: {}]   ;;  %s799_s5 = inlined_call_operand.vmem [shape: f32[32,32], index: 5, kind: input, shape index: {}]   ;;  %s800_s6 = inlined_call_operand.vmem [shape: f32[1,32], index: 6, kind: input, shape index: {}]   ;;  %s801_s7 = inlined_call_operand.vmem [shape: f32[2,8,32], index: 7, kind: output, shape index: {0}]   ;;  %s802_s8 = inlined_call_operand.vmem [shape: f32[1,32], index: 8, kind: output, shape index: {1}]   ;;  %s803_s9 = inlined_call_operand.vmem [shape: f32[1,32], index: 9, kind: output, shape index: {2}]  }
   0x1   :  { %s707_s11 = smov 0  }
   0x2 LB: > { %s29_s12 = sadd.s32 1, %s644_s10  ;;  %p575_p0 = scmp.ge.s32.totalorder %s648_s11, 1  ;;  %s648_s11 = sphi %s707_s11, %s20_s11   ;;  %s644_s10 = sphi %s705_s10, %s805_s10   ;;  %s640_s30 = sphi %s703_s30, %s804_s30  }
   0x3   : > { %p30_p1 = scmp.ge.s32.totalorder %s29_s12, 2  ;;  %p300_p2 = scmp.lt.s32.totalorder %s648_s11, 3 }
   0x5   : > { %s807_s12 = smov (%p30_p1, %s29_s12), 0  ;;  %p301_p3 = pnand %p575_p0, %p300_p2 }
   0x6   : > { %p340_p4 = scmp.lt.s32.totalorder (!%p301_p3), %s640_s30, 1  ;;  %p356_p5 = scmp.eq.s32.totalorder (!%p301_p3), %s640_s30, 0 }
   0x7   : > { %304 = sbr.rel (%p301_p3) target bundleno = 287 (0x11f), region = 48 }
   0xe   : > { %s341_s13 = scalar_select %p340_p4, %s640_s30, 1 }
   0xf   : > { %360 = sbr.rel (!%p356_p5) target bundleno = 22 (0x16), region = 52  ;;  %vm361_vm0 = vcmask (%p356_p5), 253952   ;;  %v650_v0 = vmov (%p356_p5), 0.0  }
  0x10   : > { %s576_s14 = sshll.u32 %s341_s13, 3  ;;  %362 = vst.msk [vmem:[%s802_s8] sm:$0x1] (%p356_p5), %vm361_vm0, %v650_v0  ;;  %363 = vst.msk [vmem:[%s803_s9] sm:$0x1] (%p356_p5), %vm361_vm0, %v650_v0 }
  0x11   : > { %s729_s17 = scalar_lea.vmem %s794_s0, %s576_s14  ;;  %s734_s20 = scalar_lea.vmem %s801_s7, %s576_s14 }
  0x16 PF: > { %v402_v1 = vld [vmem:[%s799_s5] sm:$0xff]  ;;  %v403_v2 = vld [vmem:[%s799_s5 + $0x8] sm:$0xff]  ;;  %v404_v3 = vld [vmem:[%s799_s5 + $0x10] sm:$0xff]  ;;  %v651_v4 = vmov 0.0   ;;  %vm652_vm1 = vmmov 0   ;;  %v378_v12 = vlaneseq  ;;  %s372_s24 = scalar_lea.vmem %s795_s1, %s640_s30  ;;  %s374_s27 = scalar_lea.vmem %s796_s2, %s640_s30  ;;  %vm416_vm2 = vcmask 261120  }
  0x17   : > { %589 = vmatprep.subr.bf16.mxu0 %v651_v4  ;;  %v407_v5 = vpack.c.bf16 %v403_v2, %v402_v1  ;;  %v405_v6 = vld [vmem:[%s799_s5 + $0x18] sm:$0xff]  ;;  %593 = vmatprep.mubr.msk.bf16.mxu0 %vm652_vm1, %v651_v4  ;;  %v364_v7 = vld [vmem:[%s797_s3] sm:$0x1]  ;;  %vm470_vm3 = vcmask 253952  }
  0x18   : > { %v366_v8 = vld [vmem:[%s798_s4] sm:$0x1]  ;;  %v365_v9 = vmul.f32 0.0625, %v364_v7  ;;  %v408_v11 = vpack.c.bf16 %v405_v6, %v404_v3  ;;  %v379_v15 = vshrl.u32 %v378_v12, 7 }
  0x19   : > { %v367_v10 = vmul.f32 0.0625, %v366_v8  ;;  %590 = vmatpush3.bf16.msra.mxu0 %v407_v5  ;;  %v376_v19 = vld [vmem:[%s729_s17] sm:$0xff] }
  0x1a   : > { %591 = vmatprep.subr.bf16.mxu0 %v651_v4  ;;  %v368_v13 = vmul.f32 %v365_v9, %v365_v9  ;;  %v380_v17 = vsub.s32 0, %v379_v15  ;;  %v579_v23 = vld [vmem:[%s372_s24] ss:$0 sm:$0xff] }
  0x1b   : > { %v580_v25 = vld [vmem:[%s374_s27] ss:$0 sm:$0xff] }
  0x1c   : > { %v369_v14 = vsub.f32 %v367_v10, %v368_v13  ;;  %v381_v18 = vrot.slane %v365_v9, %v380_v17  ;;  %v581_v30 = vld [vmem:[%s800_s6] ss:$0 sm:$0xff] }
  0x1d   : > { %592 = vmatpush3.bf16.msra.mxu0 %v408_v11  ;;  %v461_v48 = vld [vmem:[%s802_s8] sm:$0x1] }
  0x1e   : > { %v370_v16 = vadd.f32 1e-05, %v369_v14  ;;  %v383_v20 = vsub.f32 %v376_v19, %v381_v18  ;;  %v472_v51 = vld [vmem:[%s803_s9] sm:$0x1] }
  0x20   : > { %624 = vrsqrt.f32 %v370_v16 }
  0x2a   : > { %v625_v21 = vpop.eup %624 }
  0x2b   : > { %v388_v22 = vrot.slane %v625_v21, %v380_v17 }
  0x2d   : > { %v390_v24 = vmul.f32 %v388_v22, %v383_v20 }
  0x2f   : > { %v395_v26 = vmul.f32 %v579_v23, %v390_v24 }
  0x31   : > { %v400_v27 = vadd.f32 %v580_v25, %v395_v26 }
  0x33   : > { %v401_v28 = vmax.f32 %v400_v27, 0.0 }
  0x35   : > { %v406_v29 = vpack.c.bf16 %v401_v28, %v401_v28 }
  0x37   : > { %594 = vmatmul.mubr.msk.bf16.vlgmr.msra.gmra.mrb[0].mxu0 %vm416_vm2, %v406_v29 }
 0x10a   : > { %v454_v31 = vpop.f32.mrb[0].mxu0 }
 0x10b   : > { %v455_v32 = vadd.f32 %v581_v30, %v454_v31  ;;  %v595_v33 = vpop.f32.mrb[1].mxu0 }
 0x10c   : > { %v457_v34 = vpop.f32.mrb[2].mxu0 }
 0x10d   : > { %460 = vst.msk [vmem:[%s734_s20] sm:$0xff] %vm416_vm2, %v455_v32  ;;  %v462_v35 = vsel %vm416_vm2, %v455_v32, 0.0  ;;  %v473_v36 = vmul.f32 %v455_v32, %v455_v32  ;;  %v596_v37 = vpop.f32.mrb[3].mxu0 }
 0x10e   : > { %v463_v38 = vrot.slane %v462_v35, 4 }
 0x10f   : > { %v474_v39 = vsel %vm416_vm2, %v473_v36, 0.0 }
 0x110   : > { %v464_v40 = vadd.f32 %v463_v38, %v462_v35  ;;  %v475_v41 = vrot.slane %v474_v39, 4 }
 0x112   : > { %v465_v42 = vrot.slane %v464_v40, 2  ;;  %v476_v43 = vadd.f32 %v475_v41, %v474_v39 }
 0x114   : > { %v466_v44 = vadd.f32 %v465_v42, %v464_v40  ;;  %v477_v45 = vrot.slane %v476_v43, 2 }
 0x116   : > { %v467_v46 = vrot.slane %v466_v44, 1  ;;  %v478_v47 = vadd.f32 %v477_v45, %v476_v43 }
 0x118   : > { %v468_v49 = vadd.f32 %v467_v46, %v466_v44  ;;  %v479_v50 = vrot.slane %v478_v47, 1 }
 0x11a   : > { %v469_v52 = vadd.f32 %v468_v49, %v461_v48  ;;  %v480_v53 = vadd.f32 %v479_v50, %v478_v47 }
 0x11c   : > { %471 = vst.msk [vmem:[%s802_s8] sm:$0x1] %vm470_vm3, %v469_v52  ;;  %v481_v54 = vadd.f32 %v480_v53, %v472_v51 }
 0x11e   : > { %482 = vst.msk [vmem:[%s803_s9] sm:$0x1] %vm470_vm3, %v481_v54 }
 0x11f PF: > { %s20_s11 = sadd.s32 1, %s648_s11   ;;  %s804_s30 = smov %s644_s10 }
 0x120   : > { %p17_p6 = scmp.ge.s32.totalorder %s20_s11, 4   ;;  %s805_s10 = smov %s807_s12 }
 0x122   :  { %19 = sbr.rel (!%p17_p6) target bundleno = 2 (0x2), region = 100 }

// kernel: decoder_forward.15
= control target key start
LH: loop header
LB: loop body
LE: loop exit
PB: predicated region body
PF: predicated region fallthrough
CT: control target
= control target key end

     0   :  { %s698_s0 = inlined_call_operand.vmem [shape: f32[2,8,32], index: 0, kind: input, shape index: {}]   ;;  %s699_s1 = inlined_call_operand.vmem [shape: f32[2,32], index: 1, kind: input, shape index: {}]   ;;  %s700_s2 = inlined_call_operand.vmem [shape: f32[2,32], index: 2, kind: input, shape index: {}]   ;;  %s701_s3 = inlined_call_operand.vmem [shape: f32[1,32], index: 3, kind: input, shape index: {}]   ;;  %s702_s4 = inlined_call_operand.vmem [shape: f32[1,32], index: 4, kind: input, shape index: {}]   ;;  %s703_s5 = inlined_call_operand.vmem [shape: f32[1,32], index: 5, kind: input, shape index: {}]   ;;  %s704_s6 = inlined_call_operand.<no memory space> [shape: f32[1,1], index: 6, kind: input, shape index: {}]   ;;  %s705_s7 = inlined_call_operand.hbm [shape: f32[1,2,8], index: 7, kind: output, shape index: {}]  }
   0x1   :  { %v12_v0 = vstv %s704_s6 }
   0x2   :  { %13 = vst [vmem:[#allocation2] sm:$0x1] %v12_v0 }
   0x3   :  { %14 = vsyncpa [#allocation4], 0  ;;  %s617_s26 = smov 0   ;;  %s619_s27 = smov 0  }
   0x4   :  { %s621_s28 = smov 0  }
   0x5 LB: > { %s459_s6 = sadd.s32 4294967295, %s568_s28   ;;  %s29_s29 = sadd.s32 1, %s564_s27  ;;  %s568_s28 = sphi %s621_s28, %s20_s28   ;;  %s564_s27 = sphi %s619_s27, %s708_s27   ;;  %s560_s26 = sphi %s617_s26, %s707_s26  }
   0x6   : > { %p30_p0 = scmp.ge.s32.totalorder %s29_s29, 2  ;;  %p462_p1 = scmp.ge.s32.totalorder %s568_s28, 1 }
   0x7   : > { %p256_p2 = scmp.lt.s32.totalorder %s568_s28, 3 }
   0x8   : > { %s710_s29 = smov (%p30_p0, %s29_s29), 0 }
   0x9   : > { %p257_p3 = pnand %p462_p1, %p256_p2 }
   0xa   : > { %v293_v1 = vld [vmem:[%s701_s3] sm:$0x1] (!%p257_p3)  ;;  %v570_v3 = vmov (!%p257_p3), 0.0   ;;  %p285_p4 = scmp.lt.s32.totalorder (!%p257_p3), %s560_s26, 1  ;;  %v307_v6 = vlaneseq (!%p257_p3)  ;;  %vm571_vm0 = vmmov (!%p257_p3), 0   ;;  %v572_v9 = vmov (!%p257_p3), 0   ;;  %s301_s18 = scalar_lea.vmem (!%p257_p3), %s699_s1, %s560_s26 }
   0xb   : > { %260 = sbr.rel (%p257_p3) target bundleno = 279 (0x117), region = 48  ;;  %v295_v2 = vld [vmem:[%s702_s4] sm:$0x1] (!%p257_p3)  ;;  %473 = vmatprep.subr.bf16.mxu0 (!%p257_p3), %v570_v3  ;;  %v294_v4 = vmul.f32 (!%p257_p3), 0.0625, %v293_v1  ;;  %475 = vmatprep.mubr.msk.bf16.mxu0 (!%p257_p3), %vm571_vm0, %v570_v3  ;;  %s303_s21 = scalar_lea.vmem (!%p257_p3), %s700_s2, %s560_s26  ;;  %vm344_vm1 = vcmask (!%p257_p3), 261120   ;;  %vm392_vm2 = vcmask (!%p257_p3), 57344  }
   0xc   : > { %v296_v5 = vmul.f32 (!%p257_p3), 0.0625, %v295_v2  ;;  %v334_v8 = vld [vmem:[#allocation2] sm:$0x1] (!%p257_p3)  ;;  %513 = vset.pattern.permute.xlu0 (!%p257_p3), %v572_v9  ;;  %v308_v11 = vshrl.u32 (!%p257_p3), %v307_v6, 7  ;;  %s573_s24 = smov (!%p257_p3), [#allocation3]   ;;  %p662_p5 = scmp.eq.s32.totalorder (!%p257_p3), %s459_s6, 1 }
   0xd   : > { %v297_v7 = vmul.f32 (!%p257_p3), %v294_v4, %v294_v4  ;;  %337 = vperm.xlu0 (!%p257_p3), %513, %v334_v8   ;;  %v464_v19 = vld [vmem:[%s301_s18] ss:$0 sm:$0xff] (!%p257_p3)  ;;  %s403_s25 = sshll.u32 (!%p257_p3), %s573_s24, 4  ;;  %s391_s8 = scalar_lea.vmem (!%p257_p3), [#allocation3], %s560_s26  ;;  %s404_s25 = int_to_ptr.vmem [resolvable:$true] %s403_s25 }
   0xe   : > { %v309_v13 = vsub.s32 (!%p257_p3), 0, %v308_v11  ;;  %v465_v21 = vld [vmem:[%s303_s21] ss:$0 sm:$0xff] (!%p257_p3)  ;;  %s516_s9 = scalar_lea.vmem (!%p257_p3), %s404_s25, 32  ;;  %p523_p9 = scmp.lt.s32.totalorder (!%p257_p3), %s404_s25, %s404_s25 }
   0xf   : > { %v298_v10 = vsub.f32 (!%p257_p3), %v296_v5, %v297_v7  ;;  %v331_v27 = vld [vmem:[%s703_s5] sm:$0x1] (!%p257_p3)  ;;  %p517_p6 = scmp.ne.s32.totalorder (!%p257_p3), %s404_s25, %s516_s9  ;;  %p524_p10 = scmp.lt.s32.totalorder (!%p257_p3), %s516_s9, %s516_s9 }
  0x10   : > { %v310_v14 = vrot.slane (!%p257_p3), %v294_v4, %v309_v13  ;;  %v332_v28 = vpack.c.bf16 (!%p257_p3), %v331_v27, %v331_v27 }
  0x11   : > { %v299_v12 = vadd.f32 (!%p257_p3), 1e-05, %v298_v10  ;;  %p518_p7 = pnand (!%p257_p3), %p517_p6, %p662_p5  ;;  %p525_p11 = por (!%p257_p3), %p524_p10, %p523_p9 }
  0x12   : > { %s286_s11 = scalar_select %p285_p4, %s560_s26, 1 }
  0x13   : > { %514 = vrsqrt.f32 %v299_v12  ;;  %p519_p8 = pneg %p518_p7 }
  0x14   : > { %s463_s12 = sshll.u32 %s286_s11, 3 }
  0x15   : > { %s291_s15 = scalar_lea.vmem %s698_s0, %s463_s12  ;;  %p526_p12 = pnand %p525_p11, %p519_p8 }
  0x16   : > { %v305_v15 = vld [vmem:[%s291_s15] sm:$0xff] }
  0x17   : > { %v312_v16 = vsub.f32 %v305_v15, %v310_v14 }
  0x1d   : > { %v515_v17 = vpop.eup %514 }
  0x1e   : > { %v317_v18 = vrot.slane %v515_v17, %v309_v13 }
  0x20   : > { %v319_v20 = vmul.f32 %v317_v18, %v312_v16 }
  0x22   : > { %v324_v22 = vmul.f32 %v464_v19, %v319_v20 }
  0x24   : > { %v329_v23 = vadd.f32 %v465_v21, %v324_v22 }
  0x26   : > { %v330_v24 = vmax.f32 %v329_v23, 0.0 }
  0x28   : > { %v333_v25 = vpack.c.bf16 %v330_v24, %v330_v24 }
  0x2a   : > { %v349_v26 = vsel %vm344_vm1, %v333_v25, 0 }
  0x2b   : > { %474 = vmatpush3.bf16.xpose.msra.mxu0 %v349_v26 }
  0x32   : > { %476 = vmatmul.mubr.msk.bf16.vlgmr.msra.gmra.mrb[0].mxu0 %vm344_vm1, %v332_v28 }
  0x8c   : > { %v338_v29 = vpop.permute.xlu0 %337 }
  0x8d   : > { %v343_v30 = vrot.slane %v338_v29, %v309_v13 }
 0x105   : > { %v385_v31 = vpop.f32.mrb[0].mxu0 }
 0x106   : > { %v386_v32 = vadd.f32 %v385_v31, %v343_v30  ;;  %v477_v33 = vpop.f32.mrb[1].mxu0 }
 0x107   : > { %v388_v34 = vpop.f32.mrb[2].mxu0 }
 0x108   : > { %v478_v35 = vpop.f32.mrb[3].mxu0  ;;  %393 = vst.msk [vmem:[%s391_s8] sm:$0x1] %vm392_vm2, %v386_v32 }
 0x109   : > { %529 = shalt.err (!%p526_p12)
}
 0x10a   : > { %s530_s11 = scalar_lea.hbm %s705_s7, 32 }
 0x10b   : > { %p531_p13 = scmp.ne.s32.totalorder %s705_s7, %s530_s11  ;;  %p536_p2 = scmp.lt.u32.totalorder %s530_s11, %s705_s7 }
 0x10d   : > { %p532_p0 = pnand %p531_p13, %p662_p5 }
 0x10f   : > { %p533_p1 = pneg %p532_p0 }
 0x111   : > { %p538_p3 = pnand %p536_p2, %p533_p1 }
 0x113   : > { %541 = shalt.err (!%p538_p3)
}
 0x114   : > { %480 = dma.vmem_to_hbm [thread:$0]  (%p662_p5), %s404_s25, 32, %s705_s7, [#allocation4]  }
 0x115   : > { %555 = dma.done.wait (%p662_p5), [#allocation4], 32  }
 0x116   : > { %557 = vsyncadd (%p662_p5), [#allocation4], 4294967264 }
 0x117 PF: > { %s20_s28 = sadd.s32 1, %s568_s28   ;;  %s707_s26 = smov %s564_s27 }
 0x118   : > { %p17_p4 = scmp.ge.s32.totalorder %s20_s28, 4   ;;  %s708_s27 = smov %s710_s29 }
 0x11a   :  { %19 = sbr.rel (!%p17_p4) target bundleno = 5 (0x5), region = 79 }
 0x121   :  { %416 = vsyncpa [#allocation4], 1 }
 0x122   :  { %418 = vsyncpa [#allocation4 + $0x1], 1 }

// kernel: decoder_forward.8
= control target key start
LH: loop header
LB: loop body
LE: loop exit
PB: predicated region body
PF: predicated region fallthrough
CT: control target
= control target key end

     0   :  { %16 = vsyncpa [#allocation3], 0  ;;  %s1349_s0 = inlined_call_operand.vmem [shape: f32[2,8], index: 0, kind: input, shape index: {}]   ;;  %s1350_s1 = inlined_call_operand.vmem [shape: f32[2,8], index: 1, kind: input, shape index: {}]   ;;  %s1351_s2 = inlined_call_operand.vmem [shape: f32[8,32], index: 2, kind: input, shape index: {}]   ;;  %s1352_s3 = inlined_call_operand.vmem [shape: f32[1,32], index: 3, kind: input, shape index: {}]   ;;  %s1353_s4 = inlined_call_operand.hbm [shape: f32[6,8,32], index: 4, kind: input, shape index: {}]   ;;  %s1354_s5 = inlined_call_operand.vmem [shape: f32[6,1,32], index: 5, kind: input, shape index: {}]   ;;  %s1355_s6 = inlined_call_operand.hbm [shape: f32[6,8,32], index: 6, kind: input, shape index: {}]   ;;  %s1356_s7 = inlined_call_operand.vmem [shape: f32[6,1,32], index: 7, kind: input, shape index: {}]   ;;  %s1357_s8 = inlined_call_operand.vmem [shape: f32[2,32], index: 8, kind: output, shape index: {0}]   ;;  %s1358_s9 = inlined_call_operand.vmem [shape: f32[6,2,32], index: 9, kind: output, shape index: {1}]   ;;  %s1359_s10 = inlined_call_operand.vmem [shape: f32[6,2,32], index: 10, kind: output, shape index: {2}]  }
   0x1   :  { %17 = vsyncpa [#allocation5], 0  ;;  %s1066_s13 = smov [#allocation2]   ;;  %s1018_s17 = scalar_lea.hbm %s1353_s4, 768 }
   0x2   :  { %s31_s14 = sshll.u32 %s1066_s13, 4  ;;  %p1019_p0 = scmp.ne.s32.totalorder %s1353_s4, %s1018_s17  ;;  %s32_s14 = int_to_ptr.vmem [resolvable:$true] %s31_s14 }
   0x3   :  { %p1022_p1 = scmp.lt.u32.totalorder %s1018_s17, %s1353_s4 }
   0x5   :  { %p1024_p2 = pnand %p1022_p1, %p1019_p0 }
   0x7   :  { %1027 = shalt.err (!%p1024_p2)
}
   0x8   :  { %s1028_s22 = scalar_lea.vmem %s32_s14, 768  ;;  %p1033_p4 = scmp.lt.s32.totalorder %s32_s14, %s32_s14 }
   0x9   :  { %p1029_p3 = scmp.ne.s32.totalorder %s32_s14, %s1028_s22  ;;  %p1034_p5 = scmp.lt.s32.totalorder %s1028_s22, %s1028_s22 }
   0xb   :  { %p1035_p6 = por %p1034_p5, %p1033_p4 }
   0xd   :  { %p1036_p7 = pnand %p1035_p6, %p1029_p3 }
   0xf   :  { %1039 = shalt.err (!%p1036_p7)
}
  0x10   :  { %s1067_s23 = smov 128   ;;  %s1068_s24 = smov 8  }
  0x11   :  { %37 = dma.hbm_to_vmem [thread:$0]  %s1353_s4, 768, %s32_s14, [#allocation3], %s1067_s23, %s1067_s23, %s1068_s24  }
  0x12   :  { %s1069_s27 = smov [#allocation4]   ;;  %s1040_s11 = scalar_lea.hbm %s1355_s6, 768 }
  0x13   :  { %s45_s28 = sshll.u32 %s1069_s27, 4  ;;  %p1041_p8 = scmp.ne.s32.totalorder %s1355_s6, %s1040_s11  ;;  %s46_s28 = int_to_ptr.vmem [resolvable:$true] %s45_s28 }
  0x14   :  { %p1044_p9 = scmp.lt.u32.totalorder %s1040_s11, %s1355_s6 }
  0x16   :  { %p1046_p10 = pnand %p1044_p9, %p1041_p8 }
  0x18   :  { %1049 = shalt.err (!%p1046_p10)
}
  0x19   :  { %s1050_s17 = scalar_lea.vmem %s46_s28, 768  ;;  %p1055_p12 = scmp.lt.s32.totalorder %s46_s28, %s46_s28 }
  0x1a   :  { %p1051_p11 = scmp.ne.s32.totalorder %s46_s28, %s1050_s17  ;;  %p1056_p13 = scmp.lt.s32.totalorder %s1050_s17, %s1050_s17 }
  0x1c   :  { %p1057_p0 = por %p1056_p13, %p1055_p12 }
  0x1e   :  { %p1058_p1 = pnand %p1057_p0, %p1051_p11 }
  0x20   :  { %1061 = shalt.err (!%p1058_p1)
}
  0x21   :  { %51 = dma.hbm_to_vmem [thread:$0]  %s1355_s6, 768, %s46_s28, [#allocation5], %s1067_s23, %s1067_s23, %s1068_s24  }
  0x22   :  { %1062 = dma.done.wait [#allocation3], 768  }
  0x23   :  { %1063 = vsyncadd [#allocation3], 4294966528 }
  0x24   :  { %1064 = dma.done.wait [#allocation5], 768  }
  0x25   :  { %1065 = vsyncadd [#allocation5], 4294966528  ;;  %v1070_v0 = vmov 0.0   ;;  %vm1071_vm0 = vmmov 0   ;;  %v62_v1 = vld [vmem:[%s1351_s2] sm:$0xff]  ;;  %vm76_vm1 = vcmask 1043456  }
  0x26   :  { %934 = vmatprep.subr.bf16.mxu0 %v1070_v0  ;;  %936 = vmatprep.mubr.msk.bf16.mxu0 %vm1071_vm0, %v1070_v0  ;;  %v61_v2 = vld [vmem:[%s1349_s0] sm:$0x3]  ;;  %v181_v3 = vld [vmem:[#allocation4] sm:$0xff]  ;;  %v64_v4 = vpack.c.bf16 %v62_v1, %v62_v1  ;;  %v240_v9 = vld [vmem:[#allocation2 + $0x8] sm:$0xff]  ;;  %vm72_vm2 = vcmask 64512   ;;  %vm120_vm3 = vcmask 254976  }
  0x27   :  { %940 = vmatprep.subr.bf16.mxu1 %v1070_v0  ;;  %942 = vmatprep.mubr.msk.bf16.mxu1 %vm1071_vm0, %v1070_v0  ;;  %v183_v5 = vpack.c.bf16 %v181_v3, %v181_v3  ;;  %v123_v6 = vld [vmem:[#allocation2] sm:$0xff]  ;;  %v63_v11 = vpack.c.bf16 %v61_v2, %v61_v2  ;;  %v242_v12 = vpack.c.bf16 %v240_v9, %v240_v9  ;;  %v301_v16 = vld [vmem:[#allocation4 + $0x8] sm:$0xff]  ;;  %v362_v19 = vld [vmem:[#allocation2 + $0x10] sm:$0xff] }
  0x28   :  { %v122_v7 = vld [vmem:[%s1350_s1] sm:$0x3]  ;;  %v125_v8 = vpack.c.bf16 %v123_v6, %v123_v6  ;;  %v78_v10 = vsel %vm76_vm1, %v64_v4, 0  ;;  %v303_v20 = vpack.c.bf16 %v301_v16, %v301_v16  ;;  %v364_v23 = vpack.c.bf16 %v362_v19, %v362_v19  ;;  %v484_v29 = vld [vmem:[#allocation2 + $0x18] sm:$0xff]  ;;  %v545_v36 = vld [vmem:[#allocation4 + $0x18] sm:$0xff] }
  0x29   :  { %935 = vmatpush3.bf16.msra.mxu0 %v78_v10  ;;  %v124_v14 = vpack.c.bf16 %v122_v7, %v122_v7  ;;  %v195_v15 = vsel %vm76_vm1, %v183_v5, 0  ;;  %v255_v17 = vsel %vm76_vm1, %v242_v12, 0  ;;  %v180_v18 = vld [vmem:[%s1350_s1] sm:$0x3]  ;;  %v486_v33 = vpack.c.bf16 %v484_v29, %v484_v29  ;;  %v667_v46 = vld [vmem:[#allocation4 + $0x20] sm:$0xff]  ;;  %v728_v49 = vld [vmem:[#allocation2 + $0x28] sm:$0xff] }
  0x2a   :  { %v137_v13 = vsel %vm76_vm1, %v125_v8, 0  ;;  %946 = vmatprep.subr.bf16.mxu0 %v1070_v0  ;;  %v238_v21 = vld [vmem:[%s1350_s1] sm:$0x3]  ;;  %v182_v22 = vpack.c.bf16 %v180_v18, %v180_v18  ;;  %v316_v25 = vsel %vm76_vm1, %v303_v20, 0  ;;  %v377_v27 = vsel %vm76_vm1, %v364_v23, 0  ;;  %v789_v56 = vld [vmem:[#allocation4 + $0x28] sm:$0xff] }
  0x2b   :  { %941 = vmatpush3.bf16.msra.mxu1 %v137_v13  ;;  %v241_v24 = vpack.c.bf16 %v238_v21, %v238_v21  ;;  %v423_v26 = vld [vmem:[#allocation4 + $0x10] sm:$0xff]  ;;  %v499_v37 = vsel %vm76_vm1, %v486_v33, 0  ;;  %v547_v40 = vpack.c.bf16 %v545_v36, %v545_v36  ;;  %v669_v50 = vpack.c.bf16 %v667_v46, %v667_v46 }
  0x2c   :  { %952 = vmatprep.subr.bf16.mxu1 %v1070_v0  ;;  %937 = vmatmul.mubr.msk.bf16.vlgmr.msra.gmra.mrb[0].mxu0 %vm72_vm2, %v63_v11  ;;  %v299_v28 = vld [vmem:[%s1350_s1] sm:$0x3]  ;;  %v425_v30 = vpack.c.bf16 %v423_v26, %v423_v26  ;;  %v730_v53 = vpack.c.bf16 %v728_v49, %v728_v49  ;;  %v791_v59 = vpack.c.bf16 %v789_v56, %v789_v56 }
  0x2d   :  { %947 = vmatpush3.bf16.msra.mxu0 %v195_v15  ;;  %948 = vmatprep.mubr.msk.bf16.mxu0 %vm1071_vm0, %v1070_v0  ;;  %v360_v31 = vld [vmem:[%s1350_s1] sm:$0x3]  ;;  %v302_v32 = vpack.c.bf16 %v299_v28, %v299_v28  ;;  %v560_v45 = vsel %vm76_vm1, %v547_v40, 0  ;;  %v682_v55 = vsel %vm76_vm1, %v669_v50, 0  ;;  %v889_v50 = vld [vmem:[%s1356_s7 + $0x3] ss:$0 sm:$0xff] }
  0x2e   :  { %943 = vmatmul.mubr.msk.bf16.vlgmr.msra.gmra.mrb[0].mxu1 %vm72_vm2, %v124_v14  ;;  %958 = vmatprep.subr.bf16.mxu0 %v1070_v0  ;;  %v363_v34 = vpack.c.bf16 %v360_v31, %v360_v31  ;;  %v438_v35 = vsel %vm76_vm1, %v425_v30, 0  ;;  %v421_v38 = vld [vmem:[%s1350_s1] sm:$0x3]  ;;  %v743_v57 = vsel %vm76_vm1, %v730_v53, 0  ;;  %v804_v63 = vsel %vm76_vm1, %v791_v59, 0 }
  0x2f   :  { %953 = vmatpush3.bf16.msra.mxu1 %v255_v17  ;;  %954 = vmatprep.mubr.msk.bf16.mxu1 %vm1071_vm0, %v1070_v0  ;;  %v606_v39 = vld [vmem:[#allocation2 + $0x20] sm:$0xff]  ;;  %v424_v42 = vpack.c.bf16 %v421_v38, %v421_v38 }
  0x30   :  { %964 = vmatprep.subr.bf16.mxu1 %v1070_v0  ;;  %v482_v41 = vld [vmem:[%s1350_s1] sm:$0x3]  ;;  %v608_v43 = vpack.c.bf16 %v606_v39, %v606_v39  ;;  %v881_v38 = vld [vmem:[%s1356_s7 + $0x2] ss:$0 sm:$0xff]  ;;  %v885_v39 = vld [vmem:[%s1354_s5 + $0x3] ss:$0 sm:$0xff] }
  0x31   :  { %v485_v44 = vpack.c.bf16 %v482_v41, %v482_v41  ;;  %v543_v48 = vld [vmem:[%s1350_s1] sm:$0x3] }
  0x32   :  { %v621_v47 = vsel %vm76_vm1, %v608_v43, 0  ;;  %v604_v51 = vld [vmem:[%s1350_s1] sm:$0x3]  ;;  %v546_v52 = vpack.c.bf16 %v543_v48, %v543_v48 }
  0x33   :  { %v607_v54 = vpack.c.bf16 %v604_v51, %v604_v51  ;;  %v665_v58 = vld [vmem:[%s1350_s1] sm:$0x3]  ;;  %v893_v51 = vld [vmem:[%s1354_s5 + $0x4] ss:$0 sm:$0xff] }
  0x34   :  { %949 = vmatmul.mubr.msk.bf16.vlgmr.msra.gmra.mrb[4].mxu0 %vm72_vm2, %v182_v22  ;;  %v726_v60 = vld [vmem:[%s1350_s1] sm:$0x3]  ;;  %v668_v61 = vpack.c.bf16 %v665_v58, %v665_v58 }
  0x35   :  { %959 = vmatpush3.bf16.msra.mxu0 %v316_v25  ;;  %960 = vmatprep.mubr.msk.bf16.mxu0 %vm1071_vm0, %v1070_v0  ;;  %v729_v62 = vpack.c.bf16 %v726_v60, %v726_v60  ;;  %v787_v1 = vld [vmem:[%s1350_s1] sm:$0x3] }
  0x36   :  { %955 = vmatmul.mubr.msk.bf16.vlgmr.msra.gmra.mrb[4].mxu1 %vm72_vm2, %v241_v24  ;;  %970 = vmatprep.subr.bf16.mxu0 %v1070_v0  ;;  %v790_v2 = vpack.c.bf16 %v787_v1, %v787_v1  ;;  %v862_v3 = vld [vmem:[%s1352_s3] ss:$0 sm:$0xff]  ;;  %v869_v15 = vld [vmem:[%s1354_s5 + $0x1] ss:$0 sm:$0xff] }
  0x37   :  { %965 = vmatpush3.bf16.msra.mxu1 %v377_v27  ;;  %966 = vmatprep.mubr.msk.bf16.mxu1 %vm1071_vm0, %v1070_v0  ;;  %v864_v4 = vld [vmem:[%s1354_s5] ss:$0 sm:$0xff]  ;;  %v873_v26 = vld [vmem:[%s1356_s7 + $0x1] ss:$0 sm:$0xff]  ;;  %v877_v27 = vld [vmem:[%s1354_s5 + $0x2] ss:$0 sm:$0xff] }
  0x38   :  { %976 = vmatprep.subr.bf16.mxu1 %v1070_v0  ;;  %v866_v14 = vld [vmem:[%s1356_s7] ss:$0 sm:$0xff] }
  0x3c   :  { %961 = vmatmul.mubr.msk.bf16.vlgmr.msra.gmra.mrb[8].mxu0 %vm72_vm2, %v302_v32 }
  0x3d   :  { %971 = vmatpush3.bf16.msra.mxu0 %v438_v35  ;;  %972 = vmatprep.mubr.msk.bf16.mxu0 %vm1071_vm0, %v1070_v0 }
  0x3e   :  { %967 = vmatmul.mubr.msk.bf16.vlgmr.msra.gmra.mrb[8].mxu1 %vm72_vm2, %v363_v34  ;;  %982 = vmatprep.subr.bf16.mxu0 %v1070_v0 }
  0x3f   :  { %977 = vmatpush3.bf16.msra.mxu1 %v499_v37  ;;  %978 = vmatprep.mubr.msk.bf16.mxu1 %vm1071_vm0, %v1070_v0 }
  0x40   :  { %988 = vmatprep.subr.bf16.mxu1 %v1070_v0 }
  0x44   :  { %973 = vmatmul.mubr.msk.bf16.vlgmr.msra.gmra.mrb[12].mxu0 %vm72_vm2, %v424_v42 }
  0x45   :  { %983 = vmatpush3.bf16.msra.mxu0 %v560_v45  ;;  %984 = vmatprep.mubr.msk.bf16.mxu0 %vm1071_vm0, %v1070_v0 }
  0x46   :  { %979 = vmatmul.mubr.msk.bf16.vlgmr.msra.gmra.mrb[12].mxu1 %vm72_vm2, %v485_v44  ;;  %994 = vmatprep.subr.bf16.mxu0 %v1070_v0 }
  0x47   :  { %989 = vmatpush3.bf16.msra.mxu1 %v621_v47  ;;  %990 = vmatprep.mubr.msk.bf16.mxu1 %vm1071_vm0, %v1070_v0 }
  0x48   :  { %1000 = vmatprep.subr.bf16.mxu1 %v1070_v0 }
  0x4c   :  { %985 = vmatmul.mubr.msk.bf16.vlgmr.msra.gmra.mrb[16].mxu0 %vm72_vm2, %v546_v52 }
  0x4d   :  { %995 = vmatpush3.bf16.msra.mxu0 %v682_v55  ;;  %996 = vmatprep.mubr.msk.bf16.mxu0 %vm1071_vm0, %v1070_v0 }
  0x4e   :  { %991 = vmatmul.mubr.msk.bf16.vlgmr.msra.gmra.mrb[16].mxu1 %vm72_vm2, %v607_v54  ;;  %1006 = vmatprep.subr.bf16.mxu0 %v1070_v0 }
  0x4f   :  { %1001 = vmatpush3.bf16.msra.mxu1 %v743_v57  ;;  %1002 = vmatprep.mubr.msk.bf16.mxu1 %vm1071_vm0, %v1070_v0 }
  0x54   :  { %997 = vmatmul.mubr.msk.bf16.vlgmr.msra.gmra.mrb[20].mxu0 %vm72_vm2, %v668_v61 }
  0x55   :  { %1007 = vmatpush3.bf16.msra.mxu0 %v804_v63  ;;  %1008 = vmatprep.mubr.msk.bf16.mxu0 %vm1071_vm0, %v1070_v0  ;;  %v901_v63 = vld [vmem:[%s1354_s5 + $0x5] ss:$0 sm:$0xff] }
  0x56   :  { %1003 = vmatmul.mubr.msk.bf16.vlgmr.msra.gmra.mrb[20].mxu1 %vm72_vm2, %v729_v62  ;;  %v897_v62 = vld [vmem:[%s1356_s7 + $0x4] ss:$0 sm:$0xff] }
  0x5c   :  { %1009 = vmatmul.mubr.msk.bf16.vlgmr.msra.gmra.mrb[24].mxu0 %vm72_vm2, %v790_v2 }
  0xff   :  { %v114_v5 = vpop.f32.mrb[0].mxu0 }
 0x100   :  { %v115_v6 = vadd.f32 %v862_v3, %v114_v5  ;;  %v938_v7 = vpop.f32.mrb[1].mxu0 }
 0x101   :  { %v173_v8 = vpop.f32.mrb[0].mxu1  ;;  %v117_v9 = vpop.f32.mrb[2].mxu0 }
 0x102   :  { %v174_v10 = vadd.f32 %v864_v4, %v173_v8  ;;  %v944_v11 = vpop.f32.mrb[1].mxu1  ;;  %121 = vst.msk [vmem:[%s1357_s8] sm:$0x3] %vm120_vm3, %v115_v6  ;;  %v939_v0 = vpop.f32.mrb[3].mxu0 }
 0x103   :  { %v176_v12 = vpop.f32.mrb[2].mxu1  ;;  %v905_v11 = vld [vmem:[%s1356_s7 + $0x5] ss:$0 sm:$0xff] }
 0x104   :  { %179 = vst.msk [vmem:[%s1358_s9] sm:$0x3] %vm120_vm3, %v174_v10  ;;  %v945_v13 = vpop.f32.mrb[3].mxu1 }
 0x107   :  { %v231_v16 = vpop.f32.mrb[4].mxu0 }
 0x108   :  { %v232_v17 = vadd.f32 %v866_v14, %v231_v16  ;;  %v950_v18 = vpop.f32.mrb[5].mxu0 }
 0x109   :  { %v291_v19 = vpop.f32.mrb[4].mxu1  ;;  %v234_v20 = vpop.f32.mrb[6].mxu0 }
 0x10a   :  { %v292_v21 = vadd.f32 %v869_v15, %v291_v19  ;;  %v956_v22 = vpop.f32.mrb[5].mxu1  ;;  %237 = vst.msk [vmem:[%s1359_s10] sm:$0x3] %vm120_vm3, %v232_v17  ;;  %v951_v23 = vpop.f32.mrb[7].mxu0 }
 0x10b   :  { %v294_v24 = vpop.f32.mrb[6].mxu1 }
 0x10c   :  { %871 = vst.msk [vmem:[%s1358_s9 + $0x2] sm:$0x3] %vm120_vm3, %v292_v21  ;;  %v957_v25 = vpop.f32.mrb[7].mxu1 }
 0x10f   :  { %v352_v28 = vpop.f32.mrb[8].mxu0 }
 0x110   :  { %v353_v29 = vadd.f32 %v873_v26, %v352_v28  ;;  %v962_v30 = vpop.f32.mrb[9].mxu0 }
 0x111   :  { %v413_v31 = vpop.f32.mrb[8].mxu1  ;;  %v355_v32 = vpop.f32.mrb[10].mxu0 }
 0x112   :  { %v414_v33 = vadd.f32 %v877_v27, %v413_v31  ;;  %v968_v34 = vpop.f32.mrb[9].mxu1  ;;  %875 = vst.msk [vmem:[%s1359_s10 + $0x2] sm:$0x3] %vm120_vm3, %v353_v29  ;;  %v963_v35 = vpop.f32.mrb[11].mxu0 }
 0x113   :  { %v416_v36 = vpop.f32.mrb[10].mxu1 }
 0x114   :  { %879 = vst.msk [vmem:[%s1358_s9 + $0x4] sm:$0x3] %vm120_vm3, %v414_v33  ;;  %v969_v37 = vpop.f32.mrb[11].mxu1 }
 0x117   :  { %v474_v40 = vpop.f32.mrb[12].mxu0 }
 0x118   :  { %v475_v41 = vadd.f32 %v881_v38, %v474_v40  ;;  %v974_v42 = vpop.f32.mrb[13].mxu0 }
 0x119   :  { %v535_v43 = vpop.f32.mrb[12].mxu1  ;;  %v477_v44 = vpop.f32.mrb[14].mxu0 }
 0x11a   :  { %v536_v45 = vadd.f32 %v885_v39, %v535_v43  ;;  %v980_v46 = vpop.f32.mrb[13].mxu1  ;;  %883 = vst.msk [vmem:[%s1359_s10 + $0x4] sm:$0x3] %vm120_vm3, %v475_v41  ;;  %v975_v47 = vpop.f32.mrb[15].mxu0 }
 0x11b   :  { %v538_v48 = vpop.f32.mrb[14].mxu1 }
 0x11c   :  { %887 = vst.msk [vmem:[%s1358_s9 + $0x6] sm:$0x3] %vm120_vm3, %v536_v45  ;;  %v981_v49 = vpop.f32.mrb[15].mxu1 }
 0x11f   :  { %v596_v52 = vpop.f32.mrb[16].mxu0 }
 0x120   :  { %v597_v53 = vadd.f32 %v889_v50, %v596_v52  ;;  %v986_v54 = vpop.f32.mrb[17].mxu0 }
 0x121   :  { %v657_v55 = vpop.f32.mrb[16].mxu1  ;;  %v599_v56 = vpop.f32.mrb[18].mxu0 }
 0x122   :  { %v658_v57 = vadd.f32 %v893_v51, %v657_v55  ;;  %v992_v58 = vpop.f32.mrb[17].mxu1  ;;  %891 = vst.msk [vmem:[%s1359_s10 + $0x6] sm:$0x3] %vm120_vm3, %v597_v53  ;;  %v987_v59 = vpop.f32.mrb[19].mxu0 }
 0x123   :  { %v660_v60 = vpop.f32.mrb[18].mxu1 }
 0x124   :  { %895 = vst.msk [vmem:[%s1358_s9 + $0x8] sm:$0x3] %vm120_vm3, %v658_v57  ;;  %v993_v61 = vpop.f32.mrb[19].mxu1 }
 0x127   :  { %v718_v1 = vpop.f32.mrb[20].mxu0 }
 0x128   :  { %v719_v2 = vadd.f32 %v897_v62, %v718_v1  ;;  %v998_v3 = vpop.f32.mrb[21].mxu0 }
 0x129   :  { %v779_v4 = vpop.f32.mrb[20].mxu1  ;;  %v721_v5 = vpop.f32.mrb[22].mxu0 }
 0x12a   :  { %v780_v6 = vadd.f32 %v901_v63, %v779_v4  ;;  %v1004_v7 = vpop.f32.mrb[21].mxu1  ;;  %899 = vst.msk [vmem:[%s1359_s10 + $0x8] sm:$0x3] %vm120_vm3, %v719_v2  ;;  %v999_v8 = vpop.f32.mrb[23].mxu0 }
 0x12b   :  { %v782_v9 = vpop.f32.mrb[22].mxu1 }
 0x12c   :  { %903 = vst.msk [vmem:[%s1358_s9 + $0xa] sm:$0x3] %vm120_vm3, %v780_v6  ;;  %v1005_v10 = vpop.f32.mrb[23].mxu1 }
 0x12f   :  { %v840_v0 = vpop.f32.mrb[24].mxu0 }
 0x130   :  { %v841_v12 = vadd.f32 %v905_v11, %v840_v0  ;;  %v1010_v13 = vpop.f32.mrb[25].mxu0 }
 0x131   :  { %v843_v14 = vpop.f32.mrb[26].mxu0 }
 0x132   :  { %907 = vst.msk [vmem:[%s1359_s10 + $0xa] sm:$0x3] %vm120_vm3, %v841_v12  ;;  %v1011_v15 = vpop.f32.mrb[27].mxu0 }
 0x133   :  { %860 = vsyncpa [#allocation3], 1 }
 0x134   :  { %861 = vsyncpa [#allocation5], 1 }

</bundles_post_ra>
